<compile_context>
chip_gen: v7x
topology: tpu7x:2x2x1
jax: 0.10.0
libtpu: 0.0.40
codegen_flags: <defaults>
</compile_context>

<pallas_src>
import jax
import jax.numpy as jnp
from jax.experimental import pallas as pl
from jax.experimental.pallas import tpu as pltpu


LANE = 128


def _round_up(x, m):
    return (x + m - 1) // m * m


def _pick_vmem_limit():
    """Generation-aware scoped-VMEM limit: ~3/4 of physical, capped at 96 MiB."""
    try:
        cap = int(pltpu.get_tpu_info().vmem_capacity_bytes)
        return max(32 << 20, min(cap * 3 // 4, 96 << 20))
    except Exception:
        return 48 << 20


# ----------------------------- Pallas kernel -------------------------------

def _make_bottleneck_kernel(TH, W, PADL, Wp, Cin_p, Cmid_p, Cout_p, add):
    def kernel(xm_ref, xt_ref, xb_ref, w1_ref, s1_ref, b1_ref,
               w2_ref, s2_ref, b2_ref, out_ref, y1pad_ref, slab_ref):
        # xm_ref    : (1, TH, W, Cin_p)     bf16  tile rows
        # xt_ref    : (1, 1, W, Cin_p)      bf16  top halo row (clamped)
        # xb_ref    : (1, 1, W, Cin_p)      bf16  bottom halo row (clamped)
        # w1_ref    : (Cin_p, Cmid_p)       bf16
        # s1/b1_ref : (1, Cmid_p)           f32   folded BN of cv1
        # w2_ref    : (9*Cmid_p, Cout_p)    bf16  tap-major im2col layout
        # s2/b2_ref : (1, Cout_p)           f32   folded BN of cv2
        # out_ref   : (1, TH, W, Cout_p)    bf16
        # y1pad_ref : (TH+2, Wp, Cmid_p)    bf16  zero-padded cv1 activations
        # slab_ref  : (TH*W, 9*Cmid_p)      bf16  im2col slab
        r = pl.program_id(1)
        last_r = pl.num_programs(1) - 1

        # ---- cv1 (1x1 conv) on the TH tile rows: one channel matmul --------
        x_mid = xm_ref[0, :, :, :]                              # (TH, W, Cin_p)
        y1 = jnp.dot(x_mid.reshape(TH * W, Cin_p), w1_ref[...],
                     preferred_element_type=jnp.float32)
        y1 = y1 * s1_ref[...] + b1_ref[...]
        y1 = y1 * jax.nn.sigmoid(y1)
        y1pad_ref[1:TH + 1, PADL:PADL + W, :] = (
            y1.reshape(TH, W, Cmid_p).astype(jnp.bfloat16))

        # ---- cv1 on the two halo rows: one small matmul ---------------------
        x_halo = jnp.concatenate(
            [xt_ref[0, 0, :, :], xb_ref[0, 0, :, :]], axis=0)   # (2W, Cin_p)
        yh = jnp.dot(x_halo, w1_ref[...], preferred_element_type=jnp.float32)
        yh = yh * s1_ref[...] + b1_ref[...]
        yh = (yh * jax.nn.sigmoid(yh)).astype(jnp.bfloat16)     # (2W, Cmid_p)
        y1pad_ref[0:1, PADL:PADL + W, :] = yh[0:W].reshape(1, W, Cmid_p)
        y1pad_ref[TH + 1:TH + 2, PADL:PADL + W, :] = (
            yh[W:2 * W].reshape(1, W, Cmid_p))

        # ---- zero-pad conv borders ------------------------------------------
        zcol = jnp.zeros((TH + 2, 1, Cmid_p), jnp.bfloat16)
        y1pad_ref[:, PADL - 1:PADL, :] = zcol                    # left border col
        y1pad_ref[:, PADL + W:PADL + W + 1, :] = zcol            # right border col

        @pl.when(r == 0)
        def _():  # top halo row is outside the image
            y1pad_ref[0:1, :, :] = jnp.zeros((1, Wp, Cmid_p), jnp.bfloat16)

        @pl.when(r == last_r)
        def _():  # bottom halo row is outside the image
            y1pad_ref[TH + 1:TH + 2, :, :] = jnp.zeros((1, Wp, Cmid_p),
                                                       jnp.bfloat16)

        # ---- cv2 (3x3 conv): im2col slab + ONE big-K MXU matmul ------------
        for ky in range(3):
            for kx in range(3):
                t = ky * 3 + kx
                c0 = PADL - 1 + kx
                win = y1pad_ref[ky:ky + TH, c0:c0 + W, :]        # (TH, W, Cmid_p)
                slab_ref[:, t * Cmid_p:(t + 1) * Cmid_p] = (
                    win.reshape(TH * W, Cmid_p))

        y2 = jnp.dot(slab_ref[...], w2_ref[...],
                     preferred_element_type=jnp.float32)         # (TH*W, Cout_p)
        y2 = y2 * s2_ref[...] + b2_ref[...]
        y2 = y2 * jax.nn.sigmoid(y2)

        if add:
            y2 = y2 + x_mid.reshape(TH * W, Cin_p).astype(jnp.float32)

        out_ref[0, :, :, :] = y2.reshape(TH, W, Cout_p).astype(out_ref.dtype)

    return kernel


# ------------------------------- wrappers -----------------------------------

def bottleneck_pallas_nhwc(x, kparams, *, add, row_tile=16):
    """x: (N, H, W, Cin_p) bf16, channels lane-padded.
    Returns (N, H, W, Cout_p) bf16 (padded output channels are zero)."""
    w1, s1, b1, w2, s2, b2 = kparams
    N, H, W, Cin_p = x.shape
    Cmid_p = w1.shape[1]
    Cout_p = w2.shape[1]
    TH = row_tile
    assert H % TH == 0, f"H={H} must be divisible by row_tile={TH}"
    if add:
        assert Cin_p == Cout_p
    R = H // TH

    # Scratch geometry: bf16 sublane tile is 16 -> left-pad 16 cols so the
    # interior store is aligned; only cols PADL-1 .. PADL+W are ever read.
    PADL = 16
    Wp = _round_up(PADL + W + 1, 16)

    kernel = _make_bottleneck_kernel(TH, W, PADL, Wp, Cin_p, Cmid_p, Cout_p, add)

    grid_spec = pltpu.PrefetchScalarGridSpec(
        num_scalar_prefetch=0,
        grid=(N, R),
        in_specs=[
            # tile rows
            pl.BlockSpec((1, TH, W, Cin_p), lambda n, r: (n, r, 0, 0)),
            # top halo row (clamped at the image edge; zeroed in-kernel at r==0)
            pl.BlockSpec((1, 1, W, Cin_p),
                         lambda n, r: (n, jnp.maximum(r * TH - 1, 0), 0, 0)),
            # bottom halo row (clamped; zeroed in-kernel at r==R-1)
            pl.BlockSpec((1, 1, W, Cin_p),
                         lambda n, r: (n, jnp.minimum(r * TH + TH, H - 1), 0, 0)),
            # weights / folded-BN params: constant index maps -> VMEM resident
            pl.BlockSpec((Cin_p, Cmid_p), lambda n, r: (0, 0)),
            pl.BlockSpec((1, Cmid_p), lambda n, r: (0, 0)),
            pl.BlockSpec((1, Cmid_p), lambda n, r: (0, 0)),
            pl.BlockSpec((9 * Cmid_p, Cout_p), lambda n, r: (0, 0)),
            pl.BlockSpec((1, Cout_p), lambda n, r: (0, 0)),
            pl.BlockSpec((1, Cout_p), lambda n, r: (0, 0)),
        ],
        out_specs=pl.BlockSpec((1, TH, W, Cout_p), lambda n, r: (n, r, 0, 0)),
        scratch_shapes=[
            pltpu.VMEM((TH + 2, Wp, Cmid_p), jnp.bfloat16),   # padded cv1 acts
            pltpu.VMEM((TH * W, 9 * Cmid_p), jnp.bfloat16),   # im2col slab
        ],
    )

    return pl.pallas_call(
        kernel,
        out_shape=jax.ShapeDtypeStruct((N, H, W, Cout_p), jnp.bfloat16),
        grid_spec=grid_spec,
        compiler_params=pltpu.CompilerParams(
            dimension_semantics=("parallel", "arbitrary"),
            vmem_limit_bytes=_pick_vmem_limit(),
        ),
    )(x, x, x, w1, s1, b1, w2, s2, b2)


def bottleneck_pallas(x_nchw, kparams, *, add, out_channels, row_tile=16):
    """NCHW float32 adapter matching the PyTorch module interface."""
    # TODO(synk): in a multi-layer pipeline keep activations NHWC + bf16 +
    # lane-padded end-to-end; this NCHW<->NHWC glue exists only for layout parity.
    N, Cin, H, W = x_nchw.shape
    Cin_p = kparams[0].shape[0]
    x = jnp.transpose(x_nchw, (0, 2, 3, 1)).astype(jnp.bfloat16)
    if Cin_p > Cin:
        x = jnp.pad(x, ((0, 0), (0, 0), (0, 0), (0, Cin_p - Cin)))
    out = bottleneck_pallas_nhwc(x, kparams, add=add, row_tile=row_tile)
    out = out[..., :out_channels].astype(jnp.float32)
    return jnp.transpose(out, (0, 3, 1, 2))


# --------------------- parameter construction (synthetic) -------------------

def pack_params(w1_oihw, s1, b1, w2_oihw, s2, b2, lane=LANE):
    """Fold weights/BN into the lane-padded, bf16, MXU-friendly kernel layout."""
    Cmid, Cin = w1_oihw.shape[0], w1_oihw.shape[1]
    Cout = w2_oihw.shape[0]
    Cin_p, Cmid_p, Cout_p = (_round_up(c, lane) for c in (Cin, Cmid, Cout))

    # cv1 weight: (Cin, Cmid), zero-padded, bf16.
    w1 = jnp.transpose(w1_oihw[:, :, 0, 0], (1, 0))
    w1 = jnp.pad(w1, ((0, Cin_p - Cin), (0, Cmid_p - Cmid))).astype(jnp.bfloat16)

    # cv2 weight: OIHW -> (ky, kx, Cmid, Cout) -> pad -> (9*Cmid_p, Cout_p), bf16.
    w2 = jnp.transpose(w2_oihw, (2, 3, 1, 0))
    w2 = jnp.pad(w2, ((0, 0), (0, 0), (0, Cmid_p - Cmid), (0, Cout_p - Cout)))
    w2 = w2.reshape(9 * Cmid_p, Cout_p).astype(jnp.bfloat16)

    def pad_vec(v, cp):
        return jnp.pad(v, (0, cp - v.shape[0])).reshape(1, cp).astype(jnp.float32)

    return (w1, pad_vec(s1, Cmid_p), pad_vec(b1, Cmid_p),
            w2, pad_vec(s2, Cout_p), pad_vec(b2, Cout_p))


def make_params(key, Cin, Cout, expansion=0.5, eps=1e-5):
    """Deterministic synthetic params. BN folded to eval-mode scale/bias."""
    Cmid = int(Cout * expansion)
    ks = jax.random.split(key, 10)

    w1_oihw = jax.random.normal(ks[0], (Cmid, Cin, 1, 1), jnp.float32) * 0.2
    w2_oihw = jax.random.normal(ks[1], (Cout, Cmid, 3, 3), jnp.float32) * 0.1

    def bn(kg, kb, km, kv, c):
        gamma = 1.0 + 0.3 * jax.random.normal(kg, (c,), jnp.float32)
        beta = 0.1 * jax.random.normal(kb, (c,), jnp.float32)
        mean = 0.1 * jax.random.normal(km, (c,), jnp.float32)
        var = 0.5 + jax.random.uniform(kv, (c,), jnp.float32)
        scale = gamma / jnp.sqrt(var + eps)
        bias = beta - mean * scale
        return scale, bias

    s1, b1 = bn(ks[2], ks[3], ks[4], ks[5], Cmid)
    s2, b2 = bn(ks[6], ks[7], ks[8], ks[9], Cout)

    kernel_params = pack_params(w1_oihw, s1, b1, w2_oihw, s2, b2)
    torch_like = (w1_oihw, s1, b1, w2_oihw, s2, b2)
    return Cmid, kernel_params, torch_like


# ------------------------------ pure-JAX ref ---------------------------------

def bottleneck_ref(x_nchw, torch_like, *, add):
    """f32 reference on the same bf16-rounded inputs/weights the kernel sees."""
    w1_oihw, s1, b1, w2_oihw, s2, b2 = torch_like
    f32 = lambda a: a.astype(jnp.bfloat16).astype(jnp.float32)
    x = f32(x_nchw)

    def conv_bn_silu(v, w, scale, bias, pad):
        y = jax.lax.conv_general_dilated(
            v, w, window_strides=(1, 1), padding=[(pad, pad), (pad, pad)],
            dimension_numbers=("NCHW", "OIHW", "NCHW"))
        y = y * scale[None, :, None, None] + bias[None, :, None, None]
        return y * jax.nn.sigmoid(y)

    y = conv_bn_silu(x, f32(w1_oihw), s1, b1, 0)
    y = conv_bn_silu(y, f32(w2_oihw), s2, b2, 1)
    return x + y if add else y


# ----------------------------------- main ------------------------------------

if __name__ == "__main__":
    N, Cin, H, W = 2, 8, 16, 16
    Cout = 8
    key = jax.random.PRNGKey(0)
    kx_, kp1, kp2 = jax.random.split(key, 3)
    x = jax.random.normal(kx_, (N, Cin, H, W), jnp.float32)

    # Case 1: Bottleneck(8, 8)                -> Cmid=4, add=False, row_tile=8 (R=2, halo path)
    # Case 2: Bottleneck(8, 8, expansion=1.0) -> Cmid=8, add=True,  row_tile=16 (R=1, big tile)
    for exp_, pkey, th in ((0.5, kp1, 8), (1.0, kp2, 16)):
        Cmid, kparams, torch_like = make_params(pkey, Cin, Cout, expansion=exp_)
        add = True and (Cmid == Cout)            # shortcut=True

        out = bottleneck_pallas(x, kparams, add=add, out_channels=Cout,
                                row_tile=th)
        out = jax.block_until_ready(out)

        ref = bottleneck_ref(x, torch_like, add=add)
        assert out.shape == (N, Cout, H, W)
        err = float(jnp.max(jnp.abs(out - ref)))
        assert jnp.allclose(out, ref, atol=5e-2, rtol=5e-2), (
            f"mismatch (expansion={exp_}, row_tile={th}): max err {err}")

    print("KERNEL_OK")
</pallas_src>

<mosaic_0001>
module attributes {stable_mosaic.version = 11 : i64} {
  func.func @kernel(%arg0: i32, %arg1: i32, %arg2: memref<1x8x16x128xbf16, #tpu.memory_space<vmem>>, %arg3: memref<1x1x16x128xbf16, #tpu.memory_space<vmem>>, %arg4: memref<1x1x16x128xbf16, #tpu.memory_space<vmem>>, %arg5: memref<128x128xbf16, #tpu.memory_space<vmem>>, %arg6: memref<1x128xf32, #tpu.memory_space<vmem>>, %arg7: memref<1x128xf32, #tpu.memory_space<vmem>>, %arg8: memref<1152x128xbf16, #tpu.memory_space<vmem>>, %arg9: memref<1x128xf32, #tpu.memory_space<vmem>>, %arg10: memref<1x128xf32, #tpu.memory_space<vmem>>, %arg11: memref<1x8x16x128xbf16, #tpu.memory_space<vmem>>, %arg12: memref<10x48x128xbf16, #tpu.memory_space<vmem>>, %arg13: memref<128x1152xbf16, #tpu.memory_space<vmem>>) attributes {dimension_semantics = [#tpu.dimension_semantics<parallel>, #tpu.dimension_semantics<arbitrary>], iteration_bounds = array<i64: 2, 2>, scalar_prefetch = 0 : i64, scratch_operands = 2 : i64, tpu.core_type = #tpu.core_type<tc>, window_params = [{transform_indices = @transform_0, window_bounds = array<i64: 1, 8, 16, 128>}, {transform_indices = @transform_1, window_bounds = array<i64: 1, 1, 16, 128>}, {transform_indices = @transform_2, window_bounds = array<i64: 1, 1, 16, 128>}, {pipeline_mode = #tpu.pipeline_mode<synchronous>, transform_indices = @transform_3, window_bounds = array<i64: 128, 128>}, {pipeline_mode = #tpu.pipeline_mode<synchronous>, transform_indices = @transform_4, window_bounds = array<i64: 1, 128>}, {pipeline_mode = #tpu.pipeline_mode<synchronous>, transform_indices = @transform_5, window_bounds = array<i64: 1, 128>}, {pipeline_mode = #tpu.pipeline_mode<synchronous>, transform_indices = @transform_6, window_bounds = array<i64: 1152, 128>}, {pipeline_mode = #tpu.pipeline_mode<synchronous>, transform_indices = @transform_7, window_bounds = array<i64: 1, 128>}, {pipeline_mode = #tpu.pipeline_mode<synchronous>, transform_indices = @transform_8, window_bounds = array<i64: 1, 128>}, {transform_indices = @transform_9, window_bounds = array<i64: 1, 8, 16, 128>}]} {
    %c0 = arith.constant 0 : index
    %c0_0 = arith.constant 0 : index
    %c0_1 = arith.constant 0 : index
    %c0_2 = arith.constant 0 : index
    %0 = vector.load %arg2[%c0, %c0_0, %c0_1, %c0_2] : memref<1x8x16x128xbf16, #tpu.memory_space<vmem>>, vector<1x8x16x128xbf16>
    %1 = vector.shape_cast %0 : vector<1x8x16x128xbf16> to vector<8x16x128xbf16>
    %2 = vector.shape_cast %1 : vector<8x16x128xbf16> to vector<128x128xbf16>
    %c0_3 = arith.constant 0 : index
    %c0_4 = arith.constant 0 : index
    %3 = vector.load %arg5[%c0_3, %c0_4] : memref<128x128xbf16, #tpu.memory_space<vmem>>, vector<128x128xbf16>
    %cst = arith.constant dense<0.000000e+00> : vector<128x128xf32>
    %4 = tpu.matmul %2, %3, %cst {dimension_numbers = #tpu.dot_dimension_numbers<[1], [0], [0], [1], [0, 0, 1, 1], [], []>} : vector<128x128xbf16>, vector<128x128xbf16>, vector<128x128xf32> -> vector<128x128xf32>
    %c0_5 = arith.constant 0 : index
    %c0_6 = arith.constant 0 : index
    %5 = vector.load %arg6[%c0_5, %c0_6] : memref<1x128xf32, #tpu.memory_space<vmem>>, vector<1x128xf32>
    %6 = vector.broadcast %5 : vector<1x128xf32> to vector<128x128xf32>
    %7 = arith.mulf %4, %6 : vector<128x128xf32>
    %c0_7 = arith.constant 0 : index
    %c0_8 = arith.constant 0 : index
    %8 = vector.load %arg7[%c0_7, %c0_8] : memref<1x128xf32, #tpu.memory_space<vmem>>, vector<1x128xf32>
    %9 = vector.broadcast %8 : vector<1x128xf32> to vector<128x128xf32>
    %10 = arith.addf %7, %9 : vector<128x128xf32>
    %11 = arith.negf %10 : vector<128x128xf32>
    %12 = math.exp %11 : vector<128x128xf32>
    %cst_9 = arith.constant 1.000000e+00 : f32
    %13 = vector.broadcast %cst_9 : f32 to vector<128x128xf32>
    %14 = arith.addf %13, %12 : vector<128x128xf32>
    %15 = arith.divf %13, %14 : vector<128x128xf32>
    %16 = arith.mulf %10, %15 : vector<128x128xf32>
    %17 = vector.shape_cast %16 : vector<128x128xf32> to vector<8x16x128xf32>
    %18 = arith.truncf %17 : vector<8x16x128xf32> to vector<8x16x128xbf16>
    %c1 = arith.constant 1 : index
    %c16 = arith.constant 16 : index
    %c0_10 = arith.constant 0 : index
    %19 = vector.load %arg12[%c1, %c16, %c0_10] : memref<10x48x128xbf16, #tpu.memory_space<vmem>>, vector<8x16x128xbf16>
    tpu.vector_store %arg12[%c1, %c16, %c0_10], %18 {strides = array<i32>} : memref<10x48x128xbf16, #tpu.memory_space<vmem>>, vector<8x16x128xbf16>,
    %c0_11 = arith.constant 0 : index
    %c0_12 = arith.constant 0 : index
    %c0_13 = arith.constant 0 : index
    %c0_14 = arith.constant 0 : index
    %20 = vector.load %arg3[%c0_11, %c0_12, %c0_13, %c0_14] : memref<1x1x16x128xbf16, #tpu.memory_space<vmem>>, vector<1x1x16x128xbf16>
    %21 = vector.shape_cast %20 : vector<1x1x16x128xbf16> to vector<16x128xbf16>
    %c0_15 = arith.constant 0 : index
    %c0_16 = arith.constant 0 : index
    %c0_17 = arith.constant 0 : index
    %c0_18 = arith.constant 0 : index
    %22 = vector.load %arg4[%c0_15, %c0_16, %c0_17, %c0_18] : memref<1x1x16x128xbf16, #tpu.memory_space<vmem>>, vector<1x1x16x128xbf16>
    %23 = vector.shape_cast %22 : vector<1x1x16x128xbf16> to vector<16x128xbf16>
    %24 = tpu.concatenate %21, %23 in 0 : vector<16x128xbf16>, vector<16x128xbf16> -> vector<32x128xbf16>
    %c0_19 = arith.constant 0 : index
    %c0_20 = arith.constant 0 : index
    %25 = vector.load %arg5[%c0_19, %c0_20] : memref<128x128xbf16, #tpu.memory_space<vmem>>, vector<128x128xbf16>
    %cst_21 = arith.constant dense<0.000000e+00> : vector<32x128xf32>
    %26 = tpu.matmul %24, %25, %cst_21 {dimension_numbers = #tpu.dot_dimension_numbers<[1], [0], [0], [1], [0, 0, 1, 1], [], []>} : vector<32x128xbf16>, vector<128x128xbf16>, vector<32x128xf32> -> vector<32x128xf32>
    %c0_22 = arith.constant 0 : index
    %c0_23 = arith.constant 0 : index
    %27 = vector.load %arg6[%c0_22, %c0_23] : memref<1x128xf32, #tpu.memory_space<vmem>>, vector<1x128xf32>
    %28 = vector.broadcast %27 : vector<1x128xf32> to vector<32x128xf32>
    %29 = arith.mulf %26, %28 : vector<32x128xf32>
    %c0_24 = arith.constant 0 : index
    %c0_25 = arith.constant 0 : index
    %30 = vector.load %arg7[%c0_24, %c0_25] : memref<1x128xf32, #tpu.memory_space<vmem>>, vector<1x128xf32>
    %31 = vector.broadcast %30 : vector<1x128xf32> to vector<32x128xf32>
    %32 = arith.addf %29, %31 : vector<32x128xf32>
    %33 = arith.negf %32 : vector<32x128xf32>
    %34 = math.exp %33 : vector<32x128xf32>
    %cst_26 = arith.constant 1.000000e+00 : f32
    %35 = vector.broadcast %cst_26 : f32 to vector<32x128xf32>
    %36 = arith.addf %35, %34 : vector<32x128xf32>
    %37 = arith.divf %35, %36 : vector<32x128xf32>
    %38 = arith.mulf %32, %37 : vector<32x128xf32>
    %39 = arith.truncf %38 : vector<32x128xf32> to vector<32x128xbf16>
    %40 = vector.extract_strided_slice %39 {offsets = [0, 0], sizes = [16, 128], strides = [1, 1]} : vector<32x128xbf16> to vector<16x128xbf16>
    %41 = vector.shape_cast %40 : vector<16x128xbf16> to vector<1x16x128xbf16>
    %c0_27 = arith.constant 0 : index
    %c16_28 = arith.constant 16 : index
    %c0_29 = arith.constant 0 : index
    %42 = vector.load %arg12[%c0_27, %c16_28, %c0_29] : memref<10x48x128xbf16, #tpu.memory_space<vmem>>, vector<1x16x128xbf16>
    tpu.vector_store %arg12[%c0_27, %c16_28, %c0_29], %41 {strides = array<i32>} : memref<10x48x128xbf16, #tpu.memory_space<vmem>>, vector<1x16x128xbf16>,
    %43 = vector.extract_strided_slice %39 {offsets = [16, 0], sizes = [16, 128], strides = [1, 1]} : vector<32x128xbf16> to vector<16x128xbf16>
    %44 = vector.shape_cast %43 : vector<16x128xbf16> to vector<1x16x128xbf16>
    %c9 = arith.constant 9 : index
    %c16_30 = arith.constant 16 : index
    %c0_31 = arith.constant 0 : index
    %45 = vector.load %arg12[%c9, %c16_30, %c0_31] : memref<10x48x128xbf16, #tpu.memory_space<vmem>>, vector<1x16x128xbf16>
    tpu.vector_store %arg12[%c9, %c16_30, %c0_31], %44 {strides = array<i32>} : memref<10x48x128xbf16, #tpu.memory_space<vmem>>, vector<1x16x128xbf16>,
    %cst_32 = arith.constant 0.000000e+00 : bf16
    %46 = vector.broadcast %cst_32 : bf16 to vector<10x1x128xbf16>
    %c0_33 = arith.constant 0 : index
    %c15 = arith.constant 15 : index
    %c0_34 = arith.constant 0 : index
    %47 = vector.load %arg12[%c0_33, %c15, %c0_34] : memref<10x48x128xbf16, #tpu.memory_space<vmem>>, vector<10x1x128xbf16>
    tpu.vector_store %arg12[%c0_33, %c15, %c0_34], %46 {strides = array<i32>} : memref<10x48x128xbf16, #tpu.memory_space<vmem>>, vector<10x1x128xbf16>,
    %c0_35 = arith.constant 0 : index
    %c32 = arith.constant 32 : index
    %c0_36 = arith.constant 0 : index
    %48 = vector.load %arg12[%c0_35, %c32, %c0_36] : memref<10x48x128xbf16, #tpu.memory_space<vmem>>, vector<10x1x128xbf16>
    tpu.vector_store %arg12[%c0_35, %c32, %c0_36], %46 {strides = array<i32>} : memref<10x48x128xbf16, #tpu.memory_space<vmem>>, vector<10x1x128xbf16>,
    %c0_i32 = arith.constant 0 : i32
    %49 = arith.cmpi eq, %arg1, %c0_i32 : i32
    %50 = arith.extui %49 : i1 to i32
    %c0_i32_37 = arith.constant 0 : i32
    %51 = arith.cmpi ne, %50, %c0_i32_37 : i32
    scf.if %51 {
      %cst_88 = arith.constant 0.000000e+00 : bf16
      %102 = vector.broadcast %cst_88 : bf16 to vector<1x48x128xbf16>
      %c0_89 = arith.constant 0 : index
      %c0_90 = arith.constant 0 : index
      %c0_91 = arith.constant 0 : index
      %103 = vector.load %arg12[%c0_89, %c0_90, %c0_91] : memref<10x48x128xbf16, #tpu.memory_space<vmem>>, vector<1x48x128xbf16>
      tpu.vector_store %arg12[%c0_89, %c0_90, %c0_91], %102 {strides = array<i32>} : memref<10x48x128xbf16, #tpu.memory_space<vmem>>, vector<1x48x128xbf16>,
    } else {
    }
    %c1_i32 = arith.constant 1 : i32
    %52 = arith.cmpi eq, %arg1, %c1_i32 : i32
    %53 = arith.extui %52 : i1 to i32
    %c0_i32_38 = arith.constant 0 : i32
    %54 = arith.cmpi ne, %53, %c0_i32_38 : i32
    scf.if %54 {
      %cst_88 = arith.constant 0.000000e+00 : bf16
      %102 = vector.broadcast %cst_88 : bf16 to vector<1x48x128xbf16>
      %c9_89 = arith.constant 9 : index
      %c0_90 = arith.constant 0 : index
      %c0_91 = arith.constant 0 : index
      %103 = vector.load %arg12[%c9_89, %c0_90, %c0_91] : memref<10x48x128xbf16, #tpu.memory_space<vmem>>, vector<1x48x128xbf16>
      tpu.vector_store %arg12[%c9_89, %c0_90, %c0_91], %102 {strides = array<i32>} : memref<10x48x128xbf16, #tpu.memory_space<vmem>>, vector<1x48x128xbf16>,
    } else {
    }
    %c0_39 = arith.constant 0 : index
    %c15_40 = arith.constant 15 : index
    %c0_41 = arith.constant 0 : index
    %55 = vector.load %arg12[%c0_39, %c15_40, %c0_41] : memref<10x48x128xbf16, #tpu.memory_space<vmem>>, vector<8x16x128xbf16>
    %56 = vector.shape_cast %55 : vector<8x16x128xbf16> to vector<128x128xbf16>
    %c0_42 = arith.constant 0 : index
    %c0_43 = arith.constant 0 : index
    %57 = vector.load %arg13[%c0_42, %c0_43] : memref<128x1152xbf16, #tpu.memory_space<vmem>>, vector<128x128xbf16>
    tpu.vector_store %arg13[%c0_42, %c0_43], %56 {strides = array<i32>} : memref<128x1152xbf16, #tpu.memory_space<vmem>>, vector<128x128xbf16>,
    %c0_44 = arith.constant 0 : index
    %c16_45 = arith.constant 16 : index
    %c0_46 = arith.constant 0 : index
    %58 = vector.load %arg12[%c0_44, %c16_45, %c0_46] : memref<10x48x128xbf16, #tpu.memory_space<vmem>>, vector<8x16x128xbf16>
    %59 = vector.shape_cast %58 : vector<8x16x128xbf16> to vector<128x128xbf16>
    %c0_47 = arith.constant 0 : index
    %c128 = arith.constant 128 : index
    %60 = vector.load %arg13[%c0_47, %c128] : memref<128x1152xbf16, #tpu.memory_space<vmem>>, vector<128x128xbf16>
    tpu.vector_store %arg13[%c0_47, %c128], %59 {strides = array<i32>} : memref<128x1152xbf16, #tpu.memory_space<vmem>>, vector<128x128xbf16>,
    %c0_48 = arith.constant 0 : index
    %c17 = arith.constant 17 : index
    %c0_49 = arith.constant 0 : index
    %61 = vector.load %arg12[%c0_48, %c17, %c0_49] : memref<10x48x128xbf16, #tpu.memory_space<vmem>>, vector<8x16x128xbf16>
    %62 = vector.shape_cast %61 : vector<8x16x128xbf16> to vector<128x128xbf16>
    %c0_50 = arith.constant 0 : index
    %c256 = arith.constant 256 : index
    %63 = vector.load %arg13[%c0_50, %c256] : memref<128x1152xbf16, #tpu.memory_space<vmem>>, vector<128x128xbf16>
    tpu.vector_store %arg13[%c0_50, %c256], %62 {strides = array<i32>} : memref<128x1152xbf16, #tpu.memory_space<vmem>>, vector<128x128xbf16>,
    %c1_51 = arith.constant 1 : index
    %c15_52 = arith.constant 15 : index
    %c0_53 = arith.constant 0 : index
    %64 = vector.load %arg12[%c1_51, %c15_52, %c0_53] : memref<10x48x128xbf16, #tpu.memory_space<vmem>>, vector<8x16x128xbf16>
    %65 = vector.shape_cast %64 : vector<8x16x128xbf16> to vector<128x128xbf16>
    %c0_54 = arith.constant 0 : index
    %c384 = arith.constant 384 : index
    %66 = vector.load %arg13[%c0_54, %c384] : memref<128x1152xbf16, #tpu.memory_space<vmem>>, vector<128x128xbf16>
    tpu.vector_store %arg13[%c0_54, %c384], %65 {strides = array<i32>} : memref<128x1152xbf16, #tpu.memory_space<vmem>>, vector<128x128xbf16>,
    %c1_55 = arith.constant 1 : index
    %c16_56 = arith.constant 16 : index
    %c0_57 = arith.constant 0 : index
    %67 = vector.load %arg12[%c1_55, %c16_56, %c0_57] : memref<10x48x128xbf16, #tpu.memory_space<vmem>>, vector<8x16x128xbf16>
    %68 = vector.shape_cast %67 : vector<8x16x128xbf16> to vector<128x128xbf16>
    %c0_58 = arith.constant 0 : index
    %c512 = arith.constant 512 : index
    %69 = vector.load %arg13[%c0_58, %c512] : memref<128x1152xbf16, #tpu.memory_space<vmem>>, vector<128x128xbf16>
    tpu.vector_store %arg13[%c0_58, %c512], %68 {strides = array<i32>} : memref<128x1152xbf16, #tpu.memory_space<vmem>>, vector<128x128xbf16>,
    %c1_59 = arith.constant 1 : index
    %c17_60 = arith.constant 17 : index
    %c0_61 = arith.constant 0 : index
    %70 = vector.load %arg12[%c1_59, %c17_60, %c0_61] : memref<10x48x128xbf16, #tpu.memory_space<vmem>>, vector<8x16x128xbf16>
    %71 = vector.shape_cast %70 : vector<8x16x128xbf16> to vector<128x128xbf16>
    %c0_62 = arith.constant 0 : index
    %c640 = arith.constant 640 : index
    %72 = vector.load %arg13[%c0_62, %c640] : memref<128x1152xbf16, #tpu.memory_space<vmem>>, vector<128x128xbf16>
    tpu.vector_store %arg13[%c0_62, %c640], %71 {strides = array<i32>} : memref<128x1152xbf16, #tpu.memory_space<vmem>>, vector<128x128xbf16>,
    %c2 = arith.constant 2 : index
    %c15_63 = arith.constant 15 : index
    %c0_64 = arith.constant 0 : index
    %73 = vector.load %arg12[%c2, %c15_63, %c0_64] : memref<10x48x128xbf16, #tpu.memory_space<vmem>>, vector<8x16x128xbf16>
    %74 = vector.shape_cast %73 : vector<8x16x128xbf16> to vector<128x128xbf16>
    %c0_65 = arith.constant 0 : index
    %c768 = arith.constant 768 : index
    %75 = vector.load %arg13[%c0_65, %c768] : memref<128x1152xbf16, #tpu.memory_space<vmem>>, vector<128x128xbf16>
    tpu.vector_store %arg13[%c0_65, %c768], %74 {strides = array<i32>} : memref<128x1152xbf16, #tpu.memory_space<vmem>>, vector<128x128xbf16>,
    %c2_66 = arith.constant 2 : index
    %c16_67 = arith.constant 16 : index
    %c0_68 = arith.constant 0 : index
    %76 = vector.load %arg12[%c2_66, %c16_67, %c0_68] : memref<10x48x128xbf16, #tpu.memory_space<vmem>>, vector<8x16x128xbf16>
    %77 = vector.shape_cast %76 : vector<8x16x128xbf16> to vector<128x128xbf16>
    %c0_69 = arith.constant 0 : index
    %c896 = arith.constant 896 : index
    %78 = vector.load %arg13[%c0_69, %c896] : memref<128x1152xbf16, #tpu.memory_space<vmem>>, vector<128x128xbf16>
    tpu.vector_store %arg13[%c0_69, %c896], %77 {strides = array<i32>} : memref<128x1152xbf16, #tpu.memory_space<vmem>>, vector<128x128xbf16>,
    %c2_70 = arith.constant 2 : index
    %c17_71 = arith.constant 17 : index
    %c0_72 = arith.constant 0 : index
    %79 = vector.load %arg12[%c2_70, %c17_71, %c0_72] : memref<10x48x128xbf16, #tpu.memory_space<vmem>>, vector<8x16x128xbf16>
    %80 = vector.shape_cast %79 : vector<8x16x128xbf16> to vector<128x128xbf16>
    %c0_73 = arith.constant 0 : index
    %c1024 = arith.constant 1024 : index
    %81 = vector.load %arg13[%c0_73, %c1024] : memref<128x1152xbf16, #tpu.memory_space<vmem>>, vector<128x128xbf16>
    tpu.vector_store %arg13[%c0_73, %c1024], %80 {strides = array<i32>} : memref<128x1152xbf16, #tpu.memory_space<vmem>>, vector<128x128xbf16>,
    %c0_74 = arith.constant 0 : index
    %c0_75 = arith.constant 0 : index
    %82 = vector.load %arg13[%c0_74, %c0_75] : memref<128x1152xbf16, #tpu.memory_space<vmem>>, vector<128x1152xbf16>
    %c0_76 = arith.constant 0 : index
    %c0_77 = arith.constant 0 : index
    %83 = vector.load %arg8[%c0_76, %c0_77] : memref<1152x128xbf16, #tpu.memory_space<vmem>>, vector<1152x128xbf16>
    %cst_78 = arith.constant dense<0.000000e+00> : vector<128x128xf32>
    %84 = tpu.matmul %82, %83, %cst_78 {dimension_numbers = #tpu.dot_dimension_numbers<[1], [0], [0], [1], [0, 0, 1, 1], [], []>} : vector<128x1152xbf16>, vector<1152x128xbf16>, vector<128x128xf32> -> vector<128x128xf32>
    %c0_79 = arith.constant 0 : index
    %c0_80 = arith.constant 0 : index
    %85 = vector.load %arg9[%c0_79, %c0_80] : memref<1x128xf32, #tpu.memory_space<vmem>>, vector<1x128xf32>
    %86 = vector.broadcast %85 : vector<1x128xf32> to vector<128x128xf32>
    %87 = arith.mulf %84, %86 : vector<128x128xf32>
    %c0_81 = arith.constant 0 : index
    %c0_82 = arith.constant 0 : index
    %88 = vector.load %arg10[%c0_81, %c0_82] : memref<1x128xf32, #tpu.memory_space<vmem>>, vector<1x128xf32>
    %89 = vector.broadcast %88 : vector<1x128xf32> to vector<128x128xf32>
    %90 = arith.addf %87, %89 : vector<128x128xf32>
    %91 = arith.negf %90 : vector<128x128xf32>
    %92 = math.exp %91 : vector<128x128xf32>
    %cst_83 = arith.constant 1.000000e+00 : f32
    %93 = vector.broadcast %cst_83 : f32 to vector<128x128xf32>
    %94 = arith.addf %93, %92 : vector<128x128xf32>
    %95 = arith.divf %93, %94 : vector<128x128xf32>
    %96 = arith.mulf %90, %95 : vector<128x128xf32>
    %97 = vector.shape_cast %96 : vector<128x128xf32> to vector<8x16x128xf32>
    %98 = arith.truncf %97 : vector<8x16x128xf32> to vector<8x16x128xbf16>
    %c0_84 = arith.constant 0 : index
    %c0_85 = arith.constant 0 : index
    %c0_86 = arith.constant 0 : index
    %c0_87 = arith.constant 0 : index
    %99 = vector.load %arg11[%c0_84, %c0_85, %c0_86, %c0_87] : memref<1x8x16x128xbf16, #tpu.memory_space<vmem>>, vector<1x8x16x128xbf16>
    %100 = vector.shape_cast %99 : vector<1x8x16x128xbf16> to vector<8x16x128xbf16>
    %101 = vector.shape_cast %98 : vector<8x16x128xbf16> to vector<1x8x16x128xbf16>
    tpu.vector_store %arg11[%c0_84, %c0_85, %c0_86, %c0_87], %101 {strides = array<i32>} : memref<1x8x16x128xbf16, #tpu.memory_space<vmem>>, vector<1x8x16x128xbf16>,
    return
  }
  func.func @transform_0(%arg0: i32, %arg1: i32) -> (i32, i32, i32, i32) {
    %c0_i32 = arith.constant 0 : i32
    %c0_i32_0 = arith.constant 0 : i32
    %c0_i32_1 = arith.constant 0 : i32
    return %arg0, %arg1, %c0_i32, %c0_i32_0 : i32, i32, i32, i32
  }
  func.func @transform_1(%arg0: i32, %arg1: i32) -> (i32, i32, i32, i32) {
    %c8_i32 = arith.constant 8 : i32
    %0 = arith.muli %arg1, %c8_i32 : i32
    %c1_i32 = arith.constant 1 : i32
    %1 = arith.subi %0, %c1_i32 : i32
    %c0_i32 = arith.constant 0 : i32
    %2 = arith.maxsi %1, %c0_i32 : i32
    %c0_i32_0 = arith.constant 0 : i32
    %c0_i32_1 = arith.constant 0 : i32
    %c0_i32_2 = arith.constant 0 : i32
    return %arg0, %2, %c0_i32_0, %c0_i32_1 : i32, i32, i32, i32
  }
  func.func @transform_2(%arg0: i32, %arg1: i32) -> (i32, i32, i32, i32) {
    %c8_i32 = arith.constant 8 : i32
    %0 = arith.muli %arg1, %c8_i32 : i32
    %c8_i32_0 = arith.constant 8 : i32
    %1 = arith.addi %0, %c8_i32_0 : i32
    %c15_i32 = arith.constant 15 : i32
    %2 = arith.minsi %1, %c15_i32 : i32
    %c0_i32 = arith.constant 0 : i32
    %c0_i32_1 = arith.constant 0 : i32
    %c0_i32_2 = arith.constant 0 : i32
    return %arg0, %2, %c0_i32, %c0_i32_1 : i32, i32, i32, i32
  }
  func.func @transform_3(%arg0: i32, %arg1: i32) -> (i32, i32) {
    %c0_i32 = arith.constant 0 : i32
    %c0_i32_0 = arith.constant 0 : i32
    %c0_i32_1 = arith.constant 0 : i32
    return %c0_i32, %c0_i32_0 : i32, i32
  }
  func.func @transform_4(%arg0: i32, %arg1: i32) -> (i32, i32) {
    %c0_i32 = arith.constant 0 : i32
    %c0_i32_0 = arith.constant 0 : i32
    %c0_i32_1 = arith.constant 0 : i32
    return %c0_i32, %c0_i32_0 : i32, i32
  }
  func.func @transform_5(%arg0: i32, %arg1: i32) -> (i32, i32) {
    %c0_i32 = arith.constant 0 : i32
    %c0_i32_0 = arith.constant 0 : i32
    %c0_i32_1 = arith.constant 0 : i32
    return %c0_i32, %c0_i32_0 : i32, i32
  }
  func.func @transform_6(%arg0: i32, %arg1: i32) -> (i32, i32) {
    %c0_i32 = arith.constant 0 : i32
    %c0_i32_0 = arith.constant 0 : i32
    %c0_i32_1 = arith.constant 0 : i32
    return %c0_i32, %c0_i32_0 : i32, i32
  }
  func.func @transform_7(%arg0: i32, %arg1: i32) -> (i32, i32) {
    %c0_i32 = arith.constant 0 : i32
    %c0_i32_0 = arith.constant 0 : i32
    %c0_i32_1 = arith.constant 0 : i32
    return %c0_i32, %c0_i32_0 : i32, i32
  }
  func.func @transform_8(%arg0: i32, %arg1: i32) -> (i32, i32) {
    %c0_i32 = arith.constant 0 : i32
    %c0_i32_0 = arith.constant 0 : i32
    %c0_i32_1 = arith.constant 0 : i32
    return %c0_i32, %c0_i32_0 : i32, i32
  }
  func.func @transform_9(%arg0: i32, %arg1: i32) -> (i32, i32, i32, i32) {
    %c0_i32 = arith.constant 0 : i32
    %c0_i32_0 = arith.constant 0 : i32
    %c0_i32_1 = arith.constant 0 : i32
    return %arg0, %arg1, %c0_i32, %c0_i32_0 : i32, i32, i32, i32
  }
}

</mosaic_0001>

<bundles_post_ra>
// kernel: tpu_custom_call.1
= control target key start
LH: loop header
LB: loop body
LE: loop exit
PB: predicated region body
PF: predicated region fallthrough
CT: control target
= control target key end

     0   :  { %s6097_s0 = inlined_call_operand.hbm [shape: bf16[2,16,16,128], index: 0, kind: input, shape index: {}]   ;;  %s6098_s1 = inlined_call_operand.hbm [shape: bf16[2,16,16,128], index: 1, kind: input, shape index: {}]   ;;  %s6099_s2 = inlined_call_operand.hbm [shape: bf16[2,16,16,128], index: 2, kind: input, shape index: {}]   ;;  %s6100_s3 = inlined_call_operand.hbm [shape: bf16[128,128], index: 3, kind: input, shape index: {}]   ;;  %s6101_s4 = inlined_call_operand.vmem [shape: f32[1,128], index: 4, kind: input, shape index: {}]   ;;  %s6102_s5 = inlined_call_operand.vmem [shape: f32[1,128], index: 5, kind: input, shape index: {}]   ;;  %s6103_s6 = inlined_call_operand.hbm [shape: bf16[1152,128], index: 6, kind: input, shape index: {}]   ;;  %s6104_s7 = inlined_call_operand.vmem [shape: f32[1,128], index: 7, kind: input, shape index: {}]   ;;  %s6105_s8 = inlined_call_operand.vmem [shape: f32[1,128], index: 8, kind: input, shape index: {}]   ;;  %s6106_s9 = inlined_call_operand.hbm [shape: bf16[2,16,16,128], index: 9, kind: output, shape index: {}]  }
   0x1   :  { %6132 = sst [smem:[#allocation32_spill]] %s6097_s0 }
   0x2   :  { %6133 = sst [smem:[#allocation33_spill]] %s6098_s1 }
   0x3   :  { %6134 = sst [smem:[#allocation34_spill]] %s6099_s2 }
   0x4   :  { %6135 = sst [smem:[#allocation35_spill]] %s6100_s3 }
   0x5   :  { %6136 = sst [smem:[#allocation36_spill]] %s6101_s4 }
   0x6   :  { %6137 = sst [smem:[#allocation37_spill]] %s6102_s5 }
   0x7   :  { %6138 = sst [smem:[#allocation38_spill]] %s6103_s6 }
   0x8   :  { %6139 = sst [smem:[#allocation39_spill]] %s6104_s7 }
   0x9   :  { %6140 = sst [smem:[#allocation40_spill]] %s6105_s8 }
   0xa   :  { %6141 = sst [smem:[#allocation41_spill]] %s6106_s9 }
   0xb   :  { %14 = vsyncpa [#allocation5], 0 }
   0xc   :  { %16 = vsyncpa [#allocation5 + $0x1], 0 }
   0xd   :  { %17 = vsyncpa [#allocation8], 0 }
   0xe   :  { %19 = vsyncpa [#allocation8 + $0x1], 0 }
   0xf   :  { %20 = vsyncpa [#allocation11], 0 }
  0x10   :  { %21 = vsyncpa [#allocation6], 0 }
  0x11   :  { %23 = vsyncpa [#allocation6 + $0x1], 0  ;;  %s4983_s30 = smov 0   ;;  %s4985_s10 = smov 0  }
  0x12   :  { %s4987_s11 = smov 0   ;;  %s4989_s12 = smov 0  }
  0x13   :  { %s4991_s13 = smov 0   ;;  %s4993_s14 = smov 0  }
  0x14   :  { %s4995_s15 = smov 0   ;;  %s4997_s16 = smov 0  }
  0x15   :  { %s4999_s17 = smov 0   ;;  %s5001_s18 = smov 0  }
  0x16   :  { %s5003_s19 = smov 0   ;;  %s5005_s20 = smov 0  }
  0x17   :  { %s5007_s21 = smov 0   ;;  %s5009_s22 = smov 0  }
  0x18 LB: > { %6142 = sst [smem:[#allocation19_spill]] %s4867_s30  ;;  %s5054_s23 = sadd.s32 4294967295, %s4919_s22   ;;  %s4919_s22 = sphi %s5009_s22, %s29_s22   ;;  %s4915_s21 = sphi %s5007_s21, %s6224_s21   ;;  %s4911_s20 = sphi %s5005_s20, %s6223_s20   ;;  %s4907_s19 = sphi %s5003_s19, %s6233_s19   ;;  %s4903_s18 = sphi %s5001_s18, %s6221_s18   ;;  %s4899_s17 = sphi %s4999_s17, %s6232_s17   ;;  %s4895_s16 = sphi %s4997_s16, %s6231_s16   ;;  %s4891_s15 = sphi %s4995_s15, %s6230_s15   ;;  %s4887_s14 = sphi %s4993_s14, %s6229_s14   ;;  %s4883_s13 = sphi %s4991_s13, %s6228_s13   ;;  %s4879_s12 = sphi %s4989_s12, %s6227_s12   ;;  %s4875_s11 = sphi %s4987_s11, %s6226_s11   ;;  %s4871_s10 = sphi %s4985_s10, %s6218_s10   ;;  %s4867_s30 = sphi %s4983_s30, %s6217_s30  }
  0x19   : > { %6143 = sst [smem:[#allocation20_spill]] %s4871_s10  ;;  %p3555_p0 = scmp.ge.s32.totalorder %s4919_s22, 1 }
  0x1a   : > { %6144 = sst [smem:[#allocation21_spill]] %s4875_s11  ;;  %p6108_p1 = scmp.eq.s32.totalorder %s5054_s23, 0 }
  0x1b   : > { %6145 = sst [smem:[#allocation22_spill]] %s4883_s13  ;;  %p300_p3 = scmp.lt.s32.totalorder %s4919_s22, 5 }
  0x1c   : > { %6146 = sst [smem:[#allocation23_spill]] %s4903_s18  ;;  %s4921_s25 = smov [#allocation10]  }
  0x1d   : > { %6147 = sst [smem:[#allocation24_spill]] %s4907_s19  ;;  %p5060_p4 = pnand %p3555_p0, %p300_p3 }
  0x1e   : > { %6148 = sst [smem:[#allocation25_spill]] %s4911_s20  ;;  %s312_s26 = sshll.u32 %s4921_s25, 4  ;;  %s313_s26 = int_to_ptr.vmem [resolvable:$true] %s312_s26 }
  0x1f   : > { %6149 = sst [smem:[#allocation26_spill]] %s4915_s21  ;;  %p4226_p5 = pneg %p5060_p4 }
  0x20   : > { %s6150_s24 = scalar_select %p5060_p4, 1, 0 }
  0x21   : > { %p5068_p6 = pnand %p4226_p5, %p6108_p1  ;;  %s6153_s3 = sld [smem:[#allocation35_spill]] }
  0x22   : > { %6151 = sst [smem:[#allocation27_spill]] %s6150_s24 }
  0x23   : > { %p6126_p8 = pneg %p5068_p6 }
  0x27   : > { %s4615_s9 = scalar_lea.hbm %s6153_s3, 1024 }
  0x28   : > { %p4616_p7 = scmp.ne.s32.totalorder %s6153_s3, %s4615_s9  ;;  %p4622_p11 = scmp.lt.u32.totalorder %s4615_s9, %s6153_s3 }
  0x2a   : > { %p4618_p9 = pnand %p6126_p8, %p4616_p7 }
  0x2c   : > { %p4619_p10 = pneg %p4618_p9 }
  0x2e   : > { %p4624_p12 = pnand %p4622_p11, %p4619_p10 }
  0x30   : > { %4627 = shalt.err (!%p4624_p12)
}
  0x31   : > { %s4628_s28 = scalar_lea.vmem %s313_s26, 1024  ;;  %p4636_p5 = scmp.lt.s32.totalorder %s313_s26, %s313_s26 }
  0x32   : > { %p4629_p13 = scmp.ne.s32.totalorder %s313_s26, %s4628_s28  ;;  %p4637_p2 = scmp.lt.s32.totalorder %s4628_s28, %s4628_s28 }
  0x34   : > { %p4631_p0 = pnand %p4629_p13, %p6126_p8  ;;  %p4638_p1 = por %p4637_p2, %p4636_p5 }
  0x36   : > { %p4632_p3 = pneg %p4631_p0 }
  0x38   : > { %p4639_p4 = pnand %p4638_p1, %p4632_p3 }
  0x3a   : > { %4642 = shalt.err (!%p4639_p4)
}
  0x3b   : > { %s6110_s8 = smov 64   ;;  %s6112_s7 = smov 4  }
  0x3c   : > { %4229 = dma.hbm_to_vmem [thread:$0]  (!%p5068_p6), %s6153_s3, 1024, %s313_s26, [#allocation11], %s6110_s8, %s6110_s8, %s6112_s7  }
  0x3d   : > { %s38_s29 = sadd.s32 1, %s4911_s20  ;;  %s41_s25 = sadd.s32 1, %s4915_s21 }
  0x3e   : > { %p39_p1 = scmp.ge.s32.totalorder %s38_s29, 2  ;;  %p6125_p2 = scmp.eq.s32.totalorder %s4919_s22, 0 }
  0x3f   : > { %s3549_s28 = sshll.u32 %s4911_s20, 3  ;;  %s86_s18 = sadd.s32 1, %s4887_s14 }
  0x40   : > { %s6235_s29 = smov (%p39_p1, %s38_s29), 0  ;;  %s6237_s25 = smov (!%p39_p1, %s41_s25), %s4915_s21 }
  0x41   : > { %6154 = sst [smem:[#allocation28_spill]] %s6235_s29  ;;  %s46_s5 = ssub.s32 %s4911_s20, %s6235_s29 }
  0x42   : > { %s3550_s4 = sadd.s32 4294967295, %s3549_s28  ;;  %p43_p4 = scmp.ge.s32.totalorder %s6237_s25, 2 }
  0x43   : > { %p75_p7 = scmp.gt.s32.totalorder %s3550_s4, 0  ;;  %s3551_s26 = sshll.u32 %s6235_s29, 3 }
  0x44   : > { %p93_p9 = scmp.ne.s32.totalorder %s4887_s14, %s4883_s13  ;;  %s6239_s25 = smov (%p43_p4, %s6237_s25), 0 }
  0x45   : > { %6155 = sst [smem:[#allocation29_spill]] %s6239_s25  ;;  %s6241_s4 = smov (!%p75_p7, %s3550_s4), 0 }
  0x46   : > { %s5114_s9 = ssub.s32 %s4915_s21, %s6239_s25  ;;  %s3552_s19 = sadd.s32 4294967295, %s3551_s26 }
  0x47   : > { %6156 = sst [smem:[#allocation30_spill]] %s5114_s9  ;;  %s5117_s8 = sor.u32 %s46_s5, %s5114_s9 }
  0x48   : > { %p79_p10 = scmp.gt.s32.totalorder %s3552_s19, 0  ;;  %p5122_p12 = por %p93_p9, %p6125_p2 }
  0x49   : > { %p99_p13 = scmp.ne.s32.totalorder %s4883_s13, %s4879_s12  ;;  %s5128_s3 = sadd.s32 8, %s3549_s28 }
  0x4a   : > { %s6243_s19 = smov (!%p79_p10, %s3552_s19), 0  ;;  %p6158_p3 = scmp.eq.s32.totalorder %s5054_s23, 0 }
  0x4b   : > { %s82_s25 = ssub.s32 %s6241_s4, %s6243_s19  ;;  %s5138_s24 = sadd.s32 8, %s3551_s26 }
  0x4c   : > { %s83_s5 = sor.u32 %s82_s25, %s5114_s9  ;;  %p5134_p5 = por %p99_p13, %p6158_p3 }
  0x4d   : > { %p84_p1 = scmp.eq.s32.totalorder %s83_s5, 0  ;;  %p6124_p7 = scmp.lt.s32.totalorder %s4919_s22, 4 }
  0x4e   : > { %s6159_s29 = scalar_select %p5134_p5, 1, 0 }
  0x4f   : > { %s5143_s12 = scalar_select %p84_p1, %s4887_s14, %s86_s18  }
  0x50   : > { %6160 = sst [smem:[#allocation31_spill]] %s6159_s29  ;;  %s5146_s28 = sshll.u32 %s4915_s21, 5 }
  0x51   : > { %s375_s19 = sand.u32 1, %s4919_s22   ;;  %s377_s25 = sand.u32 1, %s4887_s14  }
  0x52   : > { %s3564_s13 = sshll.u32 %s377_s25, 3  ;;  %s3567_s2 = sshll.u32 %s6241_s4, 1 }
  0x53   : > { %s389_s9 = sadd.s32 %s3567_s2, %s5146_s28  ;;  %s379_s29 = scalar_lea.vmem [#allocation7], %s3564_s13 }
  0x54   : > { %s3569_s30 = sshll.u32 %s389_s9, 6  ;;  %s392_s5 = sshll.u32 %s379_s29, 4  ;;  %s5156_s5 = int_to_ptr.vmem [resolvable:$true] %s392_s5 }
  0x55   : > { %s6161_s1 = sld [smem:[#allocation33_spill]]  ;;  %p5162_p9 = pnand %p6124_p7, %p5122_p12 }
  0x56   : > { %s4924_s2 = smov [#allocation12]  }
  0x57   : > { %s331_s4 = sshll.u32 %s4924_s2, 4  ;;  %p4645_p13 = pneg %p5162_p9  ;;  %s5166_s4 = int_to_ptr.vmem [resolvable:$true] %s331_s4 }
  0x5b   : > { %s5154_s26 = scalar_lea.hbm %s6161_s1, %s3569_s30  ;;  %s5168_s30 = scalar_lea.sflag [#allocation8], %s375_s19 }
  0x5c   : > { %s4643_s10 = scalar_lea.hbm %s5154_s26, 128  ;;  %s4648_s7 = scalar_lea.hbm %s6161_s1, 4096 }
  0x5d   : > { %p4644_p10 = scmp.ne.s32.totalorder %s5154_s26, %s4643_s10  ;;  %p4649_p12 = scmp.lt.u32.totalorder %s5154_s26, %s6161_s1 }
  0x5e   : > { %p4650_p4 = scmp.lt.u32.totalorder %s4648_s7, %s4643_s10  ;;  %p4652_p7 = scmp.lt.u32.totalorder %s4643_s10, %s5154_s26 }
  0x5f   : > { %p4646_p3 = pnand %p4645_p13, %p4644_p10 }
  0x60   : > { %p4651_p0 = por %p4650_p4, %p4649_p12 }
  0x61   : > { %p4647_p1 = pneg %p4646_p3 }
  0x62   : > { %p4653_p2 = por %p4652_p7, %p4651_p0 }
  0x64   : > { %p4654_p11 = pnand %p4653_p2, %p4647_p1 }
  0x66   : > { %4657 = shalt.err (!%p4654_p11)
}
  0x67   : > { %s4658_s19 = scalar_lea.vmem %s5156_s5, 128  ;;  %s4925_s25 = smov [#allocation7]  }
  0x68   : > { %p4659_p10 = scmp.ne.s32.totalorder %s5156_s5, %s4658_s19  ;;  %s4663_s2 = sshll.u32 %s4925_s25, 4  ;;  %s4664_s2 = int_to_ptr.vmem [resolvable:$false] %s4663_s2 }
  0x69   : > { %s4665_s11 = scalar_lea.vmem %s4664_s2, 256  ;;  %p4666_p5 = scmp.lt.s32.totalorder %s5156_s5, %s4664_s2 }
  0x6a   : > { %p4661_p3 = pnand %p4659_p10, %p4645_p13  ;;  %p4667_p4 = scmp.lt.s32.totalorder %s4665_s11, %s4658_s19 }
  0x6c   : > { %p4662_p8 = pneg %p4661_p3  ;;  %p4668_p12 = por %p4667_p4, %p4666_p5 }
  0x6e   : > { %p4669_p0 = pnand %p4668_p12, %p4662_p8 }
  0x70   : > { %4672 = shalt.err (!%p4669_p0)
}
  0x71   : > { %s6163_s10 = smov 4   ;;  %s6164_s13 = smov 64  }
  0x72   : > { %4239 = dma.hbm_to_vmem [thread:$0]  (!%p5162_p9), %s5154_s26, 128, %s5156_s5, %s5168_s30, %s6164_s13, %s6164_s13, %s6163_s10  }
  0x73   : > { %s6165_s6 = sld [smem:[#allocation38_spill]]  ;;  %p6166_p8 = pneg %p5068_p6 }
  0x79   : > { %s4673_s9 = scalar_lea.hbm %s6165_s6, 9216 }
  0x7a   : > { %p4674_p2 = scmp.ne.s32.totalorder %s6165_s6, %s4673_s9  ;;  %p4680_p7 = scmp.lt.u32.totalorder %s4673_s9, %s6165_s6 }
  0x7c   : > { %p4676_p11 = pnand %p4674_p2, %p6166_p8 }
  0x7e   : > { %p4677_p5 = pneg %p4676_p11 }
  0x80   : > { %p4682_p13 = pnand %p4680_p7, %p4677_p5 }
  0x82   : > { %4685 = shalt.err (!%p4682_p13)
}
  0x83   : > { %s4686_s5 = scalar_lea.vmem %s5166_s4, 9216  ;;  %p6167_p1 = pmov %p6166_p8 }
  0x84   : > { %p4687_p9 = scmp.ne.s32.totalorder %s5166_s4, %s4686_s5  ;;  %p4694_p4 = scmp.lt.s32.totalorder %s5166_s4, %s5166_s4 }
  0x85   : > { %p4695_p12 = scmp.lt.s32.totalorder %s4686_s5, %s4686_s5 }
  0x86   : > { %p4689_p10 = pnand %p4687_p9, %p6167_p1 }
  0x87   : > { %p4696_p0 = por %p4695_p12, %p4694_p4 }
  0x88   : > { %p4690_p3 = pneg %p4689_p10 }
  0x8a   : > { %p4697_p2 = pnand %p4696_p0, %p4690_p3 }
  0x8c   : > { %4700 = shalt.err (!%p4697_p2)
}
  0x8d   : > { %4232 = dma.hbm_to_vmem [thread:$0]  (!%p5068_p6), %s6165_s6, 9216, %s5166_s4, [#allocation11], %s6164_s13, %s6164_s13, %s6163_s10  }
  0x8e   : > { %s3548_s27 = sadd.s32 4294967294, %s4919_s22   ;;  %s50_s7 = sadd.s32 1, %s4899_s17 }
  0x8f   : > { %p57_p8 = scmp.ne.s32.totalorder %s4899_s17, %s4895_s16  ;;  %p6168_p11 = scmp.eq.s32.totalorder %s5117_s8, 0 }
  0x90   : > { %p6169_p5 = scmp.eq.s32.totalorder %s4919_s22, 0  ;;  %p63_p13 = scmp.ne.s32.totalorder %s4895_s16, %s4891_s15 }
  0x91   : > { %s5234_s29 = scalar_select %p6168_p11, %s4899_s17, %s50_s7  }
  0x92   : > { %p5238_p7 = por %p6169_p5, %p57_p8  ;;  %p6171_p9 = scmp.eq.s32.totalorder %s5054_s23, 3 }
  0x93   : > { %p293_p6 = scmp.eq.s32.totalorder %s3548_s27, 3  ;;  %p6173_p10 = scmp.eq.s32.totalorder %s5054_s23, 0 }
  0x94   : > { %p5246_p1 = por %p6171_p9, %p57_p8  ;;  %s351_s8 = sand.u32 1, %s4899_s17  }
  0x95   : > { %p5252_p3 = por %p6173_p10, %p63_p13  ;;  %p5257_p4 = por %p293_p6, %p63_p13 }
  0x96   : > { %s6172_s25 = scalar_select %p5246_p1, 1, 0 }
  0x97   : > { %s6175_s2 = scalar_select %p5257_p4, 1, 0 }
  0x98   : > { %s3559_s18 = sshll.u32 %s351_s8, 6  ;;  %s3747_s19 = sshll.u32 %s4911_s20, 4 }
  0x99   : > { %s362_s5 = sadd.s32 %s3747_s19, %s5146_s28  ;;  %s355_s11 = scalar_lea.vmem [#allocation4], %s3559_s18 }
  0x9a   : > { %s3563_s26 = sshll.u32 %s362_s5, 6  ;;  %s365_s7 = sshll.u32 %s355_s11, 4  ;;  %s5268_s7 = int_to_ptr.vmem [resolvable:$true] %s365_s7 }
  0x9b   : > { %s6176_s0 = sld [smem:[#allocation32_spill]]  ;;  %p6177_p12 = scmp.lt.s32.totalorder %s4919_s22, 4 }
  0x9c   : > { %s5278_s18 = scalar_lea.sflag [#allocation5], %s351_s8 }
  0x9d   : > { %p5274_p0 = pnand %p6177_p12, %p5238_p7 }
  0x9f   : > { %p4703_p8 = pneg %p5274_p0 }
  0xa1   : > { %s5266_s27 = scalar_lea.hbm %s6176_s0, %s3563_s26  ;;  %s4706_s9 = scalar_lea.hbm %s6176_s0, 4096 }
  0xa2   : > { %s4701_s19 = scalar_lea.hbm %s5266_s27, 1024  ;;  %p4707_p7 = scmp.lt.u32.totalorder %s5266_s27, %s6176_s0 }
  0xa3   : > { %p4702_p2 = scmp.ne.s32.totalorder %s5266_s27, %s4701_s19  ;;  %p4708_p13 = scmp.lt.u32.totalorder %s4706_s9, %s4701_s19 }
  0xa4   : > { %p4710_p6 = scmp.lt.u32.totalorder %s4701_s19, %s5266_s27 }
  0xa5   : > { %p4704_p11 = pnand %p4703_p8, %p4702_p2  ;;  %p4709_p9 = por %p4708_p13, %p4707_p7 }
  0xa7   : > { %p4705_p5 = pneg %p4704_p11  ;;  %p4711_p10 = por %p4710_p6, %p4709_p9 }
  0xa9   : > { %p4712_p12 = pnand %p4711_p10, %p4705_p5 }
  0xab   : > { %4715 = shalt.err (!%p4712_p12)
}
  0xac   : > { %s4716_s8 = scalar_lea.vmem %s5268_s7, 1024  ;;  %s4926_s11 = smov [#allocation4]  }
  0xad   : > { %p4717_p2 = scmp.ne.s32.totalorder %s5268_s7, %s4716_s8  ;;  %s4721_s1 = sshll.u32 %s4926_s11, 4  ;;  %s4722_s1 = int_to_ptr.vmem [resolvable:$false] %s4721_s1 }
  0xae   : > { %s4723_s6 = scalar_lea.vmem %s4722_s1, 2048  ;;  %p4724_p1 = scmp.lt.s32.totalorder %s5268_s7, %s4722_s1 }
  0xaf   : > { %p4719_p11 = pnand %p4717_p2, %p4703_p8  ;;  %p4725_p7 = scmp.lt.s32.totalorder %s4723_s6, %s4716_s8 }
  0xb1   : > { %p4720_p4 = pneg %p4719_p11  ;;  %p4726_p13 = por %p4725_p7, %p4724_p1 }
  0xb3   : > { %p4727_p9 = pnand %p4726_p13, %p4720_p4 }
  0xb5   : > { %4730 = shalt.err (!%p4727_p9)
}
  0xb6   : > { %s6179_s19 = sld [smem:[#allocation21_spill]]  ;;  %s6180_s9 = sld [smem:[#allocation20_spill]] }
  0xb7   : > { %s6181_s5 = sld [smem:[#allocation19_spill]]  ;;  %s6182_s26 = sld [smem:[#allocation30_spill]] }
  0xb8   : > { %4236 = dma.hbm_to_vmem [thread:$0]  (!%p5274_p0), %s5266_s27, 1024, %s5268_s7, %s5278_s18, %s6164_s13, %s6164_s13, %s6163_s10  }
  0xb9   : > { %p6183_p1 = scmp.lt.s32.totalorder %s5128_s3, 15  ;;  %p6184_p4 = scmp.lt.s32.totalorder %s5138_s24, 15 }
  0xba   : > { %p6185_p6 = scmp.eq.s32.totalorder %s4919_s22, 0  ;;  %p6187_p2 = scmp.eq.s32.totalorder %s5054_s23, 0 }
  0xbb   : > { %s6245_s3 = smov (!%p6183_p1, %s5128_s3), 15  ;;  %s6247_s24 = smov (!%p6184_p4, %s5138_s24), 15 }
  0xbc   : > { %s122_s21 = sadd.s32 1, %s6179_s19  ;;  %p129_p8 = scmp.ne.s32.totalorder %s6179_s19, %s6180_s9 }
  0xbd   : > { %s118_s8 = ssub.s32 %s6245_s3, %s6247_s24  ;;  %p135_p5 = scmp.ne.s32.totalorder %s6180_s9, %s6181_s5 }
  0xbe   : > { %s119_s11 = sor.u32 %s118_s8, %s6182_s26  ;;  %p5323_p10 = por %p129_p8, %p6185_p6 }
  0xbf   : > { %p120_p12 = scmp.eq.s32.totalorder %s119_s11, 0  ;;  %p5329_p11 = por %p135_p5, %p6187_p2 }
  0xc0   : > { %s404_s27 = sand.u32 1, %s6179_s19   ;;  %s3572_s18 = sshll.u32 %s6245_s3, 1 }
  0xc1   : > { %s6188_s7 = scalar_select %p5329_p11, 1, 0 }
  0xc2   : > { %s6249_s19 = smov (!%p120_p12, %s6179_s19), %s122_s21  ;;  %s3570_s24 = sshll.u32 %s404_s27, 3 }
  0xc3   : > { %s416_s6 = sadd.s32 %s3572_s18, %s5146_s28  ;;  %s6189_s8 = sld [smem:[#allocation34_spill]] }
  0xc4   : > { %s3574_s9 = sshll.u32 %s416_s6, 6  ;;  %s406_s11 = scalar_lea.vmem [#allocation9], %s3570_s24 }
  0xc5   : > { %s419_s20 = sshll.u32 %s406_s11, 4  ;;  %p6190_p0 = scmp.lt.s32.totalorder %s4919_s22, 4  ;;  %s5343_s20 = int_to_ptr.vmem [resolvable:$true] %s419_s20 }
  0xc7   : > { %p5349_p7 = pnand %p6190_p0, %p5323_p10 }
  0xc9   : > { %s5341_s0 = scalar_lea.hbm %s6189_s8, %s3574_s9  ;;  %p4733_p9 = pneg %p5349_p7 }
  0xca   : > { %s4731_s28 = scalar_lea.hbm %s5341_s0, 128  ;;  %s4736_s18 = scalar_lea.hbm %s6189_s8, 4096 }
  0xcb   : > { %p4732_p13 = scmp.ne.s32.totalorder %s5341_s0, %s4731_s28  ;;  %p4737_p8 = scmp.lt.u32.totalorder %s5341_s0, %s6189_s8 }
  0xcc   : > { %p4738_p5 = scmp.lt.u32.totalorder %s4736_s18, %s4731_s28  ;;  %p4740_p10 = scmp.lt.u32.totalorder %s4731_s28, %s5341_s0 }
  0xcd   : > { %p4734_p1 = pnand %p4733_p9, %p4732_p13 }
  0xce   : > { %p4739_p6 = por %p4738_p5, %p4737_p8 }
  0xcf   : > { %p4735_p4 = pneg %p4734_p1 }
  0xd0   : > { %p4741_p12 = por %p4740_p10, %p4739_p6 }
  0xd2   : > { %p4742_p2 = pnand %p4741_p12, %p4735_p4 }
  0xd4   : > { %4745 = shalt.err (!%p4742_p2)
}
  0xd5   : > { %s4746_s6 = scalar_lea.vmem %s5343_s20, 128  ;;  %s4927_s9 = smov [#allocation9]  }
  0xd6   : > { %p4747_p0 = scmp.ne.s32.totalorder %s5343_s20, %s4746_s6  ;;  %s4751_s5 = sshll.u32 %s4927_s9, 4  ;;  %s4752_s5 = int_to_ptr.vmem [resolvable:$false] %s4751_s5 }
  0xd7   : > { %s4753_s26 = scalar_lea.vmem %s4752_s5, 256  ;;  %p4754_p11 = scmp.lt.s32.totalorder %s5343_s20, %s4752_s5 }
  0xd8   : > { %p4749_p13 = pnand %p4747_p0, %p4733_p9  ;;  %p4755_p8 = scmp.lt.s32.totalorder %s4753_s26, %s4746_s6 }
  0xda   : > { %p4750_p1 = pneg %p4749_p13  ;;  %p4756_p5 = por %p4755_p8, %p4754_p11 }
  0xdc   : > { %p4757_p6 = pnand %p4756_p5, %p4750_p1 }
  0xde   : > { %4760 = shalt.err (!%p4757_p6)
}
  0xdf   : > { %4242 = dma.hbm_to_vmem [thread:$0]  (!%p5349_p7), %s5341_s0, 128, %s5343_s20, %s5168_s30, %s6164_s13, %s6164_s13, %s6163_s10  }
  0xe0   : > { %s6192_s11 = sld [smem:[#allocation27_spill]] }
  0xe6   : > { %p6193_p9 = scmp.ne.s32.totalorder %s6192_s11, 0 }
  0xe7   : > { %s5385_s28 = sand.u32 (!%p6193_p9), 1, %s4895_s16  }
  0xe8   : > { %431 = sbr.rel (%p6193_p9) target bundleno = 1052 (0x41c), region = 56  ;;  %s3576_s21 = sshll.u32 (!%p6193_p9), %s5385_s28, 6 }
  0xe9   : > { %s434_s27 = scalar_lea.sflag (!%p6193_p9), [#allocation5], %s5385_s28  ;;  %s5391_s3 = scalar_lea.vmem (!%p6193_p9), [#allocation4], %s3576_s21 }
  0xef   : > { %4846 = dma.done.wait (%p5252_p3), %s434_s27, 1024  }
  0xf0   : > { %4848 = vsyncadd (%p5252_p3), %s434_s27, 4294966272  ;;  %s6194_s0 = sld [smem:[#allocation22_spill]]  ;;  %s6195_s20 = sld [smem:[#allocation31_spill]] }
  0xf1   : > { %s442_s30 = sand.u32 1, %s5054_s23  }
  0xf2   : > { %s443_s18 = scalar_lea.sflag [#allocation8], %s442_s30 }
  0xf6   : > { %s444_s10 = sand.u32 1, %s6194_s0   ;;  %p6196_p11 = scmp.ne.s32.totalorder %s6195_s20, 0 }
  0xf7   : > { %s5399_s13 = sshll.u32 %s444_s10, 3 }
  0xf8   : > { %s446_s1 = scalar_lea.vmem [#allocation7], %s5399_s13 }
  0xf9   : > { %4850 = dma.done.wait (%p6196_p11), %s443_s18, 128  }
  0xfa   : > { %4852 = vsyncadd (%p6196_p11), %s443_s18, 4294967168  ;;  %s6197_s24 = sld [smem:[#allocation20_spill]]  ;;  %p6198_p3 = scmp.ne.s32.totalorder %s6188_s7, 0 }
 0x100   : > { %s453_s6 = sand.u32 1, %s6197_s24  }
 0x101   : > { %s5407_s4 = sshll.u32 %s453_s6, 3 }
 0x102   : > { %s455_s9 = scalar_lea.vmem [#allocation9], %s5407_s4 }
 0x103   : > { %4854 = dma.done.wait (%p6198_p3), %s443_s18, 128  }
 0x104   : > { %4856 = vsyncadd (%p6198_p3), %s443_s18, 4294967168  ;;  %p6199_p7 = scmp.eq.s32.totalorder %s5054_s23, 0 }
 0x106   : > { %4858 = dma.done.wait (%p6199_p7), [#allocation11], 10240   ;;  %p6200_p4 = pmov %p6199_p7 }
 0x107   : > { %vm1103_vm0 = vcmask 1047559   ;;  %vm1104_vm1 = vsmask.f32 7966  ;;  %vm1136_vm3 = vcmask 1040384   ;;  %vm1137_vm4 = vsmask.f32 256 }
 0x108   : > { %4860 = vsyncadd (%p6200_p4), [#allocation11], 4294957056  ;;  %v1106_v1 = vld [vmem:[#allocation2] sm:$0x80]  ;;  %v1109_v2 = vld [vmem:[#allocation2 + $0x18] sm:$0x80] }
 0x109   : > { %vm5418_vm2 = vmand %vm1103_vm0, %vm1104_vm1  ;;  %v1112_v3 = vld [vmem:[#allocation2 + $0x30] sm:$0x80]  ;;  %v1115_v7 = vld [vmem:[#allocation2 + $0x48] sm:$0x80]  ;;  %s6205_s5 = sld [smem:[#allocation36_spill]]  ;;  %s6206_s27 = sld [smem:[#allocation37_spill]] }
 0x10a   : > { %v1107_v4 = vsel %vm5418_vm2, 0, %v1106_v1  ;;  %v1110_v5 = vsel %vm5418_vm2, 0, %v1109_v2  ;;  %v1113_v6 = vsel %vm5418_vm2, 0, %v1112_v3  ;;  %v4373_v8 = vld [vmem:[#allocation10] sm:$0xff]   ;;  %v1116_v9 = vsel %vm5418_vm2, 0, %v1115_v7  ;;  %vm5436_vm5 = vmand %vm1136_vm3, %vm1137_vm4  ;;  %v4375_v44 = vld [vmem:[#allocation10 + $0x8] sm:$0xff]  }
 0x10b   : > { %1108 = vst [vmem:[#allocation2] sm:$0x80] %v1107_v4  ;;  %1111 = vst [vmem:[#allocation2 + $0x18] sm:$0x80] %v1110_v5  ;;  %v1118_v10 = vld [vmem:[#allocation2 + $0x60] sm:$0x80]  ;;  %4110 = vmatprep.subr.bf16.mxu0 %v4373_v8 }
 0x10c   : > { %1114 = vst [vmem:[#allocation2 + $0x30] sm:$0x80] %v1113_v6  ;;  %v1121_v11 = vld [vmem:[#allocation2 + $0x78] sm:$0x80]  ;;  %v4374_v12 = vld [vmem:[#allocation10] sm:$0xff]   ;;  %v1119_v13 = vsel %vm5418_vm2, 0, %v1118_v10  ;;  %4111 = vmatpush3.bf16.msra.mxu0 %v4373_v8 }
 0x10d   : > { %1117 = vst [vmem:[#allocation2 + $0x48] sm:$0x80] %v1116_v9  ;;  %v1122_v14 = vsel %vm5418_vm2, 0, %v1121_v11  ;;  %v1124_v15 = vld [vmem:[#allocation2 + $0x90] sm:$0x80]  ;;  %4142 = vmatprep.subr.bf16.mxu1 %v4374_v12  ;;  %v4376_v45 = vld [vmem:[#allocation10 + $0x8] sm:$0xff]   ;;  %4112 = vmatprep.subr.bf16.mxu0 %v4375_v44 }
 0x10e   : > { %v1127_v16 = vld [vmem:[#allocation2 + $0xa8] sm:$0x80]  ;;  %1120 = vst [vmem:[#allocation2 + $0x60] sm:$0x80] %v1119_v13  ;;  %1123 = vst [vmem:[#allocation2 + $0x78] sm:$0x80] %v1122_v14  ;;  %4143 = vmatpush3.bf16.msra.mxu1 %v4374_v12 }
 0x10f   : > { %v1125_v18 = vsel %vm5418_vm2, 0, %v1124_v15  ;;  %v1128_v19 = vsel %vm5418_vm2, 0, %v1127_v16  ;;  %v1130_v20 = vld [vmem:[#allocation2 + $0xc0] sm:$0x80]  ;;  %v1133_v21 = vld [vmem:[#allocation2 + $0xd8] sm:$0x80]  ;;  %4144 = vmatprep.subr.bf16.mxu1 %v4376_v45 }
 0x110   : > { %1126 = vst [vmem:[#allocation2 + $0x90] sm:$0x80] %v1125_v18  ;;  %1129 = vst [vmem:[#allocation2 + $0xa8] sm:$0x80] %v1128_v19  ;;  %v1131_v22 = vsel %vm5418_vm2, 0, %v1130_v20  ;;  %v1134_v23 = vsel %vm5418_vm2, 0, %v1133_v21  ;;  %4113 = vmatpush3.bf16.msra.mxu0 %v4375_v44 }
 0x111   : > { %v1139_v24 = vld [vmem:[#allocation2 + $0x10] sm:$0x1]  ;;  %v1142_v25 = vld [vmem:[#allocation2 + $0x28] sm:$0x1]  ;;  %1132 = vst [vmem:[#allocation2 + $0xc0] sm:$0x80] %v1131_v22 }
 0x112   : > { %1135 = vst [vmem:[#allocation2 + $0xd8] sm:$0x80] %v1134_v23  ;;  %v1140_v26 = vsel %vm5436_vm5, 0, %v1139_v24  ;;  %v1143_v27 = vsel %vm5436_vm5, 0, %v1142_v25  ;;  %v1145_v28 = vld [vmem:[#allocation2 + $0x40] sm:$0x1]  ;;  %4145 = vmatpush3.bf16.msra.mxu1 %v4376_v45 }
 0x113   : > { %v1148_v29 = vld [vmem:[#allocation2 + $0x58] sm:$0x1]  ;;  %1141 = vst [vmem:[#allocation2 + $0x10] sm:$0x1] %v1140_v26  ;;  %1144 = vst [vmem:[#allocation2 + $0x28] sm:$0x1] %v1143_v27 }
 0x114   : > { %v1146_v30 = vsel %vm5436_vm5, 0, %v1145_v28  ;;  %v1149_v31 = vsel %vm5436_vm5, 0, %v1148_v29  ;;  %v1151_v32 = vld [vmem:[#allocation2 + $0x70] sm:$0x1]  ;;  %v1154_v33 = vld [vmem:[#allocation2 + $0x88] sm:$0x1] }
 0x115   : > { %1147 = vst [vmem:[#allocation2 + $0x40] sm:$0x1] %v1146_v30  ;;  %1150 = vst [vmem:[#allocation2 + $0x58] sm:$0x1] %v1149_v31  ;;  %v1152_v34 = vsel %vm5436_vm5, 0, %v1151_v32  ;;  %v1155_v35 = vsel %vm5436_vm5, 0, %v1154_v33 }
 0x116   : > { %v1157_v36 = vld [vmem:[#allocation2 + $0xa0] sm:$0x1]  ;;  %v1160_v37 = vld [vmem:[#allocation2 + $0xb8] sm:$0x1]  ;;  %1153 = vst [vmem:[#allocation2 + $0x70] sm:$0x1] %v1152_v34 }
 0x117   : > { %1156 = vst [vmem:[#allocation2 + $0x88] sm:$0x1] %v1155_v35  ;;  %v1158_v38 = vsel %vm5436_vm5, 0, %v1157_v36  ;;  %v1161_v39 = vsel %vm5436_vm5, 0, %v1160_v37  ;;  %v1163_v40 = vld [vmem:[#allocation2 + $0xd0] sm:$0x1] }
 0x118   : > { %v1166_v41 = vld [vmem:[#allocation2 + $0xe8] sm:$0x1]  ;;  %1159 = vst [vmem:[#allocation2 + $0xa0] sm:$0x1] %v1158_v38  ;;  %1162 = vst [vmem:[#allocation2 + $0xb8] sm:$0x1] %v1161_v39 }
 0x119   : > { %v1164_v42 = vsel %vm5436_vm5, 0, %v1163_v40  ;;  %v1167_v43 = vsel %vm5436_vm5, 0, %v1166_v41  ;;  %v4377_v46 = vld [vmem:[#allocation10 + $0x10] sm:$0xff]   ;;  %v4379_v48 = vld [vmem:[#allocation10 + $0x18] sm:$0xff]   ;;  %v4381_v50 = vld [vmem:[#allocation10 + $0x20] sm:$0xff]   ;;  %s6207_s0 = sld [smem:[#allocation23_spill]] }
 0x11a   : > { %1165 = vst [vmem:[#allocation2 + $0xd0] sm:$0x1] %v1164_v42  ;;  %1168 = vst [vmem:[#allocation2 + $0xe8] sm:$0x1] %v1167_v43  ;;  %v4378_v47 = vld [vmem:[#allocation10 + $0x10] sm:$0xff]   ;;  %4114 = vmatprep.subr.bf16.mxu0 %v4377_v46  ;;  %v4380_v49 = vld [vmem:[#allocation10 + $0x18] sm:$0xff]  }
 0x11b   : > { %4146 = vmatprep.subr.bf16.mxu1 %v4378_v47  ;;  %4115 = vmatpush3.bf16.msra.mxu0 %v4377_v46  ;;  %v4382_v51 = vld [vmem:[#allocation10 + $0x20] sm:$0xff]   ;;  %v4383_v52 = vld [vmem:[#allocation10 + $0x28] sm:$0xff]   ;;  %v4385_v56 = vld [vmem:[#allocation10 + $0x30] sm:$0xff]  }
 0x11c   : > { %4147 = vmatpush3.bf16.msra.mxu1 %v4378_v47  ;;  %4116 = vmatprep.subr.bf16.mxu0 %v4379_v48  ;;  %v4384_v53 = vld [vmem:[#allocation10 + $0x28] sm:$0xff]   ;;  %v4389_v54 = vld [vmem:[%s5391_s3] sm:$0xff]   ;;  %v4386_v57 = vld [vmem:[#allocation10 + $0x30] sm:$0xff]  }
 0x11d   : > { %4148 = vmatprep.subr.bf16.mxu1 %v4380_v49  ;;  %v4390_v55 = vld [vmem:[%s446_s1] sm:$0xff]   ;;  %4126 = vmatprep.mubr.bf16.mxu0 %v4389_v54  ;;  %v4387_v58 = vld [vmem:[#allocation10 + $0x38] sm:$0xff]   ;;  %v4393_v62 = vld [vmem:[%s5391_s3 + $0x10] sm:$0xff]  }
 0x11e   : > { %4158 = vmatprep.mubr.bf16.mxu1 %v4390_v55  ;;  %v4388_v59 = vld [vmem:[#allocation10 + $0x38] sm:$0xff]   ;;  %v4391_v60 = vld [vmem:[%s5391_s3 + $0x8] sm:$0xff]   ;;  %v4395_v0 = vld [vmem:[%s5391_s3 + $0x20] sm:$0xff]  }
 0x11f   : > { %4117 = vmatpush3.bf16.msra.mxu0 %v4379_v48  ;;  %v4392_v61 = vld [vmem:[%s455_s9] sm:$0xff]   ;;  %v4396_v1 = vld [vmem:[%s5391_s3 + $0x28] sm:$0xff]   ;;  %p3632_p10 = scmp.ne.s32.totalorder %s6207_s0, 0 }
 0x120   : > { %4149 = vmatpush3.bf16.msra.mxu1 %v4380_v49  ;;  %4118 = vmatprep.subr.bf16.mxu0 %v4381_v50  ;;  %v4394_v63 = vld [vmem:[%s5391_s3 + $0x18] sm:$0xff]   ;;  %v4397_v2 = vld [vmem:[%s5391_s3 + $0x30] sm:$0xff]  }
 0x121   : > { %4150 = vmatprep.subr.bf16.mxu1 %v4382_v51  ;;  %v4398_v3 = vld [vmem:[%s5391_s3 + $0x38] sm:$0xff]   ;;  %v5483_v4 = vld [vmem:[%s6205_s5] ss:$0 sm:$0xff]  ;;  %s5612_s3 = scalar_lea.vmem [#allocation13], %s3576_s21 }
 0x122   : > { %v5488_v6 = vld [vmem:[%s6206_s27] ss:$0 sm:$0xff] }
 0x123   : > { %4119 = vmatpush3.bf16.msra.mxu0 %v4381_v50 }
 0x124   : > { %4151 = vmatpush3.bf16.msra.mxu1 %v4382_v51  ;;  %4120 = vmatprep.subr.bf16.mxu0 %v4383_v52 }
 0x125   : > { %4152 = vmatprep.subr.bf16.mxu1 %v4384_v53 }
 0x127   : > { %4121 = vmatpush3.bf16.msra.mxu0 %v4383_v52 }
 0x128   : > { %4153 = vmatpush3.bf16.msra.mxu1 %v4384_v53  ;;  %4122 = vmatprep.subr.bf16.mxu0 %v4385_v56 }
 0x129   : > { %4154 = vmatprep.subr.bf16.mxu1 %v4386_v57 }
 0x12b   : > { %4123 = vmatpush3.bf16.msra.mxu0 %v4385_v56 }
 0x12c   : > { %4155 = vmatpush3.bf16.msra.mxu1 %v4386_v57  ;;  %4124 = vmatprep.subr.bf16.mxu0 %v4387_v58 }
 0x12d   : > { %4156 = vmatprep.subr.bf16.mxu1 %v4388_v59 }
 0x12f   : > { %4125 = vmatpush3.bf16.msra.mxu0 %v4387_v58 }
 0x130   : > { %4157 = vmatpush3.bf16.msra.mxu1 %v4388_v59 }
 0x132   : > { %4127 = vmatmul.mubr.bf16.vlgmr.msra.gmra.mrb[0].mxu0 %v4391_v60 }
 0x133   : > { %4159 = vmatmul.mubr.bf16.vlgmr.msra.gmra.mrb[0].mxu1 %v4392_v61  ;;  %4130 = vmatprep.mubr.bf16.mxu0 %v4393_v62 }
 0x13a   : > { %4131 = vmatmul.mubr.bf16.gmra.mrb[4].mxu0 %v4394_v63 }
 0x13b   : > { %4134 = vmatprep.mubr.bf16.mxu0 %v4395_v0 }
 0x142   : > { %4135 = vmatmul.mubr.bf16.gmra.mrb[8].mxu0 %v4396_v1 }
 0x143   : > { %4138 = vmatprep.mubr.bf16.mxu0 %v4397_v2 }
 0x14a   : > { %4139 = vmatmul.mubr.bf16.gmra.mrb[12].mxu0 %v4398_v3 }
 0x205   : > { %v4128_v5 = vpop.f32.mrb[0].mxu0 }
 0x206   : > { %v753_v7 = vmul.f32 %v4128_v5, %v5483_v4  ;;  %v4160_v8 = vpop.f32.mrb[0].mxu1  ;;  %v681_v9 = vpop.f32.mrb[1].mxu0 }
 0x207   : > { %v1057_v10 = vmul.f32 %v4160_v8, %v5483_v4  ;;  %v751_v11 = vmul.f32 %v5483_v4, %v681_v9  ;;  %v1033_v12 = vpop.f32.mrb[1].mxu1  ;;  %v4129_v13 = vpop.f32.mrb[2].mxu0 }
 0x208   : > { %v5494_v14 = vadd.f32 %v5488_v6, %v753_v7  ;;  %v1055_v15 = vmul.f32 %v5483_v4, %v1033_v12  ;;  %v754_v16 = vmul.f32 %v4129_v13, %v5483_v4  ;;  %v4161_v17 = vpop.f32.mrb[2].mxu1  ;;  %v684_v18 = vpop.f32.mrb[3].mxu0 }
 0x209   : > { %v5499_v19 = vadd.f32 %v5488_v6, %v1057_v10  ;;  %v5502_v20 = vadd.f32 %v5488_v6, %v751_v11  ;;  %v1058_v21 = vmul.f32 %v4161_v17, %v5483_v4  ;;  %v752_v22 = vmul.f32 %v5483_v4, %v684_v18  ;;  %v1036_v23 = vpop.f32.mrb[3].mxu1 }
 0x20a   : > { %v3602_v24 = vmul.f32 -1.442695, %v5494_v14  ;;  %v5508_v25 = vadd.f32 %v5488_v6, %v1055_v15  ;;  %v5511_v26 = vadd.f32 %v5488_v6, %v754_v16  ;;  %v1056_v27 = vmul.f32 %v5483_v4, %v1036_v23 }
 0x20b   : > { %v3630_v28 = vmul.f32 -1.442695, %v5499_v19  ;;  %v3600_v29 = vmul.f32 -1.442695, %v5502_v20  ;;  %v5517_v30 = vadd.f32 %v5488_v6, %v1058_v21  ;;  %v5520_v31 = vadd.f32 %v5488_v6, %v752_v22 }
 0x20c   : > { %4399 = vpow2.f32 %v3602_v24  ;;  %v3628_v32 = vmul.f32 -1.442695, %v5508_v25  ;;  %v3603_v33 = vmul.f32 -1.442695, %v5511_v26  ;;  %v5525_v34 = vadd.f32 %v5488_v6, %v1056_v27 }
 0x20d   : > { %4401 = vpow2.f32 %v3630_v28  ;;  %v3631_v35 = vmul.f32 -1.442695, %v5517_v30  ;;  %v4132_v36 = vpop.f32.mrb[4].mxu0  ;;  %v3601_v37 = vmul.f32 -1.442695, %v5520_v31 }
 0x20e   : > { %4403 = vpow2.f32 %v3600_v29  ;;  %v757_v38 = vmul.f32 %v4132_v36, %v5483_v4  ;;  %v697_v39 = vpop.f32.mrb[5].mxu0  ;;  %v3629_v40 = vmul.f32 -1.442695, %v5525_v34 }
 0x20f   : > { %4405 = vpow2.f32 %v3628_v32  ;;  %v755_v41 = vmul.f32 %v5483_v4, %v697_v39  ;;  %v4133_v42 = vpop.f32.mrb[6].mxu0 }
 0x210   : > { %4407 = vpow2.f32 %v3603_v33  ;;  %v5533_v43 = vadd.f32 %v5488_v6, %v757_v38  ;;  %v758_v44 = vmul.f32 %v4133_v42, %v5483_v4  ;;  %v700_v45 = vpop.f32.mrb[7].mxu0 }
 0x211   : > { %4409 = vpow2.f32 %v3631_v35  ;;  %v5537_v46 = vadd.f32 %v5488_v6, %v755_v41  ;;  %v756_v47 = vmul.f32 %v5483_v4, %v700_v45 }
 0x212   : > { %4411 = vpow2.f32 %v3601_v37  ;;  %v3606_v48 = vmul.f32 -1.442695, %v5533_v43  ;;  %v5542_v49 = vadd.f32 %v5488_v6, %v758_v44 }
 0x213   : > { %4413 = vpow2.f32 %v3629_v40  ;;  %v3604_v50 = vmul.f32 -1.442695, %v5537_v46  ;;  %v5546_v51 = vadd.f32 %v5488_v6, %v756_v47 }
 0x214   : > { %4415 = vpow2.f32 %v3606_v48  ;;  %v3607_v52 = vmul.f32 -1.442695, %v5542_v49 }
 0x215   : > { %4417 = vpow2.f32 %v3604_v50  ;;  %v3605_v53 = vmul.f32 -1.442695, %v5546_v51  ;;  %v4136_v54 = vpop.f32.mrb[8].mxu0 }
 0x216   : > { %v4400_v55 = vpop.eup %4399  ;;  %4419 = vpow2.f32 %v3607_v52  ;;  %v761_v56 = vmul.f32 %v4136_v54, %v5483_v4  ;;  %v713_v57 = vpop.f32.mrb[9].mxu0 }
 0x217   : > { %v4402_v58 = vpop.eup %4401  ;;  %v840_v59 = vadd.f32 1.0, %v4400_v55  ;;  %4421 = vpow2.f32 %v3605_v53  ;;  %v4137_v60 = vpop.f32.mrb[10].mxu0  ;;  %v759_v2 = vmul.f32 %v5483_v4, %v713_v57 }
 0x218   : > { %v4404_v61 = vpop.eup %4403  ;;  %v1084_v62 = vadd.f32 1.0, %v4402_v58  ;;  %v716_v63 = vpop.f32.mrb[11].mxu0  ;;  %v5553_v7 = vadd.f32 %v5488_v6, %v761_v56  ;;  %v762_v10 = vmul.f32 %v4137_v60, %v5483_v4 }
 0x219   : > { %v4406_v0 = vpop.eup %4405  ;;  %4423 = vrcp.f32 %v840_v59  ;;  %v838_v1 = vadd.f32 1.0, %v4404_v61  ;;  %v760_v13 = vmul.f32 %v5483_v4, %v716_v63  ;;  %v5558_v17 = vadd.f32 %v5488_v6, %v759_v2 }
 0x21a   : > { %v4408_v3 = vpop.eup %4407  ;;  %4425 = vrcp.f32 %v1084_v62  ;;  %v1082_v5 = vadd.f32 1.0, %v4406_v0  ;;  %v3610_v23 = vmul.f32 -1.442695, %v5553_v7  ;;  %v5563_v32 = vadd.f32 %v5488_v6, %v762_v10 }
 0x21b   : > { %v4410_v8 = vpop.eup %4409  ;;  %4427 = vrcp.f32 %v838_v1  ;;  %v841_v9 = vadd.f32 1.0, %v4408_v3  ;;  %v5567_v38 = vadd.f32 %v5488_v6, %v760_v13  ;;  %v3608_v48 = vmul.f32 -1.442695, %v5558_v17 }
 0x21c   : > { %v4412_v11 = vpop.eup %4411  ;;  %4429 = vrcp.f32 %v1082_v5  ;;  %v1085_v12 = vadd.f32 1.0, %v4410_v8  ;;  %v3611_v53 = vmul.f32 -1.442695, %v5563_v32 }
 0x21d   : > { %v4414_v15 = vpop.eup %4413  ;;  %4431 = vrcp.f32 %v841_v9  ;;  %v839_v16 = vadd.f32 1.0, %v4412_v11  ;;  %v4140_v18 = vpop.f32.mrb[12].mxu0  ;;  %v3609_v56 = vmul.f32 -1.442695, %v5567_v38 }
 0x21e   : > { %v4416_v21 = vpop.eup %4415  ;;  %4433 = vrcp.f32 %v1085_v12  ;;  %v1083_v22 = vadd.f32 1.0, %v4414_v15  ;;  %v765_v24 = vmul.f32 %v4140_v18, %v5483_v4  ;;  %v729_v27 = vpop.f32.mrb[13].mxu0 }
 0x21f   : > { %v4418_v28 = vpop.eup %4417  ;;  %4435 = vrcp.f32 %v839_v16  ;;  %v844_v29 = vadd.f32 1.0, %v4416_v21  ;;  %v763_v33 = vmul.f32 %v5483_v4, %v729_v27  ;;  %v4141_v35 = vpop.f32.mrb[14].mxu0 }
 0x220   : > { %v4420_v36 = vpop.eup %4419  ;;  %4437 = vrcp.f32 %v1083_v22  ;;  %v842_v37 = vadd.f32 1.0, %v4418_v28  ;;  %v766_v39 = vmul.f32 %v4141_v35, %v5483_v4  ;;  %v732_v40 = vpop.f32.mrb[15].mxu0  ;;  %v5571_v44 = vadd.f32 %v5488_v6, %v765_v24 }
 0x221   : > { %v4422_v41 = vpop.eup %4421  ;;  %4439 = vrcp.f32 %v844_v29  ;;  %v845_v42 = vadd.f32 1.0, %v4420_v36  ;;  %v764_v45 = vmul.f32 %v5483_v4, %v732_v40  ;;  %v5576_v50 = vadd.f32 %v5488_v6, %v763_v33 }
 0x222   : > { %4441 = vrcp.f32 %v842_v37  ;;  %v843_v47 = vadd.f32 1.0, %v4422_v41  ;;  %v5580_v54 = vadd.f32 %v5488_v6, %v766_v39  ;;  %v3614_v58 = vmul.f32 -1.442695, %v5571_v44 }
 0x223   : > { %v4424_v52 = vpop.eup %4423  ;;  %4443 = vrcp.f32 %v845_v42  ;;  %v5584_v4 = vadd.f32 %v5488_v6, %v764_v45  ;;  %v3612_v60 = vmul.f32 -1.442695, %v5576_v50 }
 0x224   : > { %v4426_v55 = vpop.eup %4425  ;;  %4445 = vrcp.f32 %v843_v47  ;;  %v3615_v62 = vmul.f32 -1.442695, %v5580_v54  ;;  %v888_v0 = vmul.f32 %v4424_v52, %v5494_v14 }
 0x225   : > { %v4428_v57 = vpop.eup %4427  ;;  %4447 = vpow2.f32 %v3610_v23  ;;  %v3613_v6 = vmul.f32 -1.442695, %v5584_v4  ;;  %v1096_v3 = vmul.f32 %v4426_v55, %v5499_v19 }
 0x226   : > { %v4430_v59 = vpop.eup %4429  ;;  %4449 = vpow2.f32 %v3608_v48  ;;  %v886_v9 = vmul.f32 %v4428_v57, %v5502_v20 }
 0x227   : > { %v4432_v61 = vpop.eup %4431  ;;  %4451 = vpow2.f32 %v3611_v53  ;;  %v1094_v14 = vmul.f32 %v4430_v59, %v5508_v25 }
 0x228   : > { %v4434_v63 = vpop.eup %4433  ;;  %v889_v1 = vmul.f32 %v4432_v61, %v5511_v26  ;;  %4453 = vpow2.f32 %v3609_v56 }
 0x229   : > { %v4436_v2 = vpop.eup %4435  ;;  %v1097_v5 = vmul.f32 %v4434_v63, %v5517_v30  ;;  %4455 = vpow2.f32 %v3614_v58 }
 0x22a   : > { %v4438_v8 = vpop.eup %4437  ;;  %v903_v10 = vpack.c.bf16 %v889_v1, %v888_v0  ;;  %v887_v11 = vmul.f32 %v4436_v2, %v5520_v31  ;;  %4457 = vpow2.f32 %v3612_v60 }
 0x22b   : > { %v4440_v12 = vpop.eup %4439  ;;  %v1099_v26 = vpack.c.bf16 %v1097_v5, %v1096_v3  ;;  %v1095_v13 = vmul.f32 %v4438_v8, %v5525_v34  ;;  %4459 = vpow2.f32 %v3615_v62 }
 0x22c   : > { %v4442_v15 = vpop.eup %4441  ;;  %912 = vst [vmem:[#allocation2 + $0x38] sm:$0xff] %v903_v10  ;;  %v902_v19 = vpack.c.bf16 %v887_v11, %v886_v9  ;;  %4461 = vpow2.f32 %v3613_v6  ;;  %v892_v20 = vmul.f32 %v4440_v12, %v5533_v43 }
 0x22d   : > { %v4444_v30 = vpop.eup %4443  ;;  %1102 = vst [vmem:[#allocation2 + $0xe0] sm:$0xff] %v1099_v26  ;;  %v1098_v16 = vpack.c.bf16 %v1095_v13, %v1094_v14  ;;  %v890_v25 = vmul.f32 %v4442_v15, %v5537_v46 }
 0x22e   : > { %v4446_v18 = vpop.eup %4445  ;;  %911 = vst [vmem:[#allocation2 + $0x20] sm:$0xff] %v902_v19  ;;  %v893_v31 = vmul.f32 %v4444_v30, %v5542_v49 }
 0x22f   : > { %v4448_v21 = vpop.eup %4447  ;;  %1100 = vst [vmem:[#allocation2 + $0x8] sm:$0xff] %v1098_v16  ;;  %v891_v34 = vmul.f32 %v4446_v18, %v5546_v51 }
 0x230   : > { %v4450_v22 = vpop.eup %4449  ;;  %v905_v23 = vpack.c.bf16 %v893_v31, %v892_v20  ;;  %v848_v24 = vadd.f32 1.0, %v4448_v21 }
 0x231   : > { %v4452_v27 = vpop.eup %4451  ;;  %v904_v28 = vpack.c.bf16 %v891_v34, %v890_v25  ;;  %v846_v29 = vadd.f32 1.0, %v4450_v22 }
 0x232   : > { %v4454_v33 = vpop.eup %4453  ;;  %914 = vst [vmem:[#allocation2 + $0x68] sm:$0xff] %v905_v23  ;;  %4463 = vrcp.f32 %v848_v24  ;;  %v849_v35 = vadd.f32 1.0, %v4452_v27 }
 0x233   : > { %v4456_v36 = vpop.eup %4455  ;;  %913 = vst [vmem:[#allocation2 + $0x50] sm:$0xff] %v904_v28  ;;  %4465 = vrcp.f32 %v846_v29  ;;  %v847_v43 = vadd.f32 1.0, %v4454_v33 }
 0x234   : > { %v4458_v49 = vpop.eup %4457  ;;  %4467 = vrcp.f32 %v849_v35  ;;  %v852_v37 = vadd.f32 1.0, %v4456_v36 }
 0x235   : > { %v4460_v46 = vpop.eup %4459  ;;  %4469 = vrcp.f32 %v847_v43  ;;  %v850_v51 = vadd.f32 1.0, %v4458_v49 }
 0x236   : > { %v4462_v39 = vpop.eup %4461  ;;  %4471 = vrcp.f32 %v852_v37  ;;  %v853_v40 = vadd.f32 1.0, %v4460_v46 }
 0x237   : > { %4473 = vrcp.f32 %v850_v51  ;;  %v851_v41 = vadd.f32 1.0, %v4462_v39 }
 0x238   : > { %4475 = vrcp.f32 %v853_v40 }
 0x239   : > { %4477 = vrcp.f32 %v851_v41 }
 0x23c   : > { %v4464_v42 = vpop.eup %4463 }
 0x23d   : > { %v4466_v45 = vpop.eup %4465  ;;  %v896_v52 = vmul.f32 %v4464_v42, %v5553_v7 }
 0x23e   : > { %v4468_v47 = vpop.eup %4467  ;;  %v894_v56 = vmul.f32 %v4466_v45, %v5558_v17 }
 0x23f   : > { %v4470_v48 = vpop.eup %4469  ;;  %v897_v53 = vmul.f32 %v4468_v47, %v5563_v32 }
 0x240   : > { %v4472_v55 = vpop.eup %4471  ;;  %v895_v57 = vmul.f32 %v4470_v48, %v5567_v38  ;;  %v4928_v38 = vmov (!%p3632_p10), 0  }
 0x241   : > { %v4474_v58 = vpop.eup %4473  ;;  %v907_v59 = vpack.c.bf16 %v897_v53, %v896_v52  ;;  %v900_v63 = vmul.f32 %v4472_v55, %v5571_v44  ;;  %1173 = vst [vmem:[#allocation2] sm:$0xff] (!%p3632_p10), %v4928_v38  ;;  %1174 = vst [vmem:[#allocation2 + $0x8] sm:$0xff] (!%p3632_p10), %v4928_v38 }
 0x242   : > { %v4476_v60 = vpop.eup %4475  ;;  %v906_v61 = vpack.c.bf16 %v895_v57, %v894_v56  ;;  %v898_v7 = vmul.f32 %v4474_v58, %v5576_v50  ;;  %1172 = sbr.rel (%p3632_p10) target bundleno = 585 (0x249), region = 80  ;;  %1175 = vst [vmem:[#allocation2 + $0x10] sm:$0xff] (!%p3632_p10), %v4928_v38 }
 0x243   : > { %v4478_v62 = vpop.eup %4477  ;;  %916 = vst [vmem:[#allocation2 + $0x98] sm:$0xff] %v907_v59  ;;  %v901_v0 = vmul.f32 %v4476_v60, %v5580_v54 }
 0x244   : > { %915 = vst [vmem:[#allocation2 + $0x80] sm:$0xff] %v906_v61  ;;  %v899_v32 = vmul.f32 %v4478_v62, %v5584_v4 }
 0x245   : > { %v909_v1 = vpack.c.bf16 %v901_v0, %v900_v63 }
 0x246   : > { %v908_v17 = vpack.c.bf16 %v899_v32, %v898_v7 }
 0x247   : > { %918 = vst [vmem:[#allocation2 + $0xc8] sm:$0xff] %v909_v1 }
 0x248   : > { %917 = vst [vmem:[#allocation2 + $0xb0] sm:$0xff] %v908_v17 }
 0x249 PF: > { %s6208_s20 = sld [smem:[#allocation23_spill]] }
 0x24f   : > { %p3633_p12 = scmp.ne.s32.totalorder %s6208_s20, 1 }
 0x250   : > { %v4929_v44 = vmov (!%p3633_p12), 0  }
 0x251   : > { %1179 = sbr.rel (%p3633_p12) target bundleno = 600 (0x258), region = 84  ;;  %1180 = vst [vmem:[#allocation2 + $0xd8] sm:$0xff] (!%p3633_p12), %v4929_v44  ;;  %1181 = vst [vmem:[#allocation2 + $0xe0] sm:$0xff] (!%p3633_p12), %v4929_v44 }
 0x252   : > { %1182 = vst [vmem:[#allocation2 + $0xe8] sm:$0xff] (!%p3633_p12), %v4929_v44 }
 0x258 PF: > { %v4479_v50 = vld [vmem:[#allocation12 + $0x40] sm:$0xff]   ;;  %v4483_v2 = vld [vmem:[#allocation12 + $0x48] sm:$0xff]   ;;  %v4487_v9 = vld [vmem:[#allocation12 + $0x50] sm:$0xff]   ;;  %vm1343_vm6 = vsmask.f32 7424  ;;  %s6209_s10 = sld [smem:[#allocation39_spill]] }
 0x259   : > { %v4480_v54 = vld [vmem:[#allocation12 + $0xc0] sm:$0xff]   ;;  %3838 = vmatprep.subr.bf16.mxu0 %v4479_v50  ;;  %v4484_v3 = vld [vmem:[#allocation12 + $0xc8] sm:$0xff]   ;;  %v4488_v10 = vld [vmem:[#allocation12 + $0xd0] sm:$0xff]   ;;  %s6210_s1 = sld [smem:[#allocation40_spill]]  ;;  %s6211_s24 = sld [smem:[#allocation23_spill]] }
 0x25a   : > { %v4481_v4 = vld [vmem:[#allocation12] sm:$0xff]   ;;  %3902 = vmatprep.subr.bf16.mxu1 %v4480_v54  ;;  %v4485_v5 = vld [vmem:[#allocation12 + $0x8] sm:$0xff]   ;;  %v4489_v11 = vld [vmem:[#allocation12 + $0x10] sm:$0xff]   ;;  %s6212_s6 = sld [smem:[#allocation24_spill]]  ;;  %s3389_s5 = sshll.u32 %s5612_s3, 4  ;;  %s6016_s5 = int_to_ptr.vmem [resolvable:$true] %s3389_s5 }
 0x25b   : > { %v4482_v6 = vld [vmem:[#allocation12 + $0x80] sm:$0xff]   ;;  %3839 = vmatpush3.bf16.msra.mxu0 %v4481_v4  ;;  %v4486_v8 = vld [vmem:[#allocation12 + $0x88] sm:$0xff]   ;;  %v4490_v12 = vld [vmem:[#allocation12 + $0x90] sm:$0xff]   ;;  %s6213_s27 = sld [smem:[#allocation41_spill]]  ;;  %s3373_s20 = scalar_lea.sflag [#allocation6], %s5385_s28 }
 0x25c   : > { %3903 = vmatpush3.bf16.msra.mxu1 %v4482_v6  ;;  %3840 = vmatprep.subr.bf16.mxu0 %v4483_v2  ;;  %v4491_v14 = vld [vmem:[#allocation12 + $0x58] sm:$0xff]   ;;  %v4495_v19 = vld [vmem:[#allocation12 + $0x60] sm:$0xff]   ;;  %v4499_v20 = vld [vmem:[#allocation12 + $0x68] sm:$0xff]   ;;  %s4761_s21 = scalar_lea.vmem %s6016_s5, 1024  ;;  %p6214_p0 = scmp.ne.s32.totalorder %s6172_s25, 0 }
 0x25d   : > { %3904 = vmatprep.subr.bf16.mxu1 %v4484_v3  ;;  %v4492_v26 = vld [vmem:[#allocation12 + $0xd8] sm:$0xff]   ;;  %v4496_v30 = vld [vmem:[#allocation12 + $0xe0] sm:$0xff]   ;;  %v4500_v31 = vld [vmem:[#allocation12 + $0xe8] sm:$0xff]   ;;  %p4762_p2 = scmp.ne.s32.totalorder %s6016_s5, %s4761_s21  ;;  %s4930_s30 = smov [#allocation13]  }
 0x25e   : > { %v4493_v13 = vld [vmem:[#allocation12 + $0x18] sm:$0xff]   ;;  %v4497_v16 = vld [vmem:[#allocation12 + $0x20] sm:$0xff]   ;;  %v4501_v21 = vld [vmem:[#allocation12 + $0x28] sm:$0xff]  }
 0x25f   : > { %3841 = vmatpush3.bf16.msra.mxu0 %v4485_v5  ;;  %v4494_v15 = vld [vmem:[#allocation12 + $0x98] sm:$0xff]   ;;  %v4498_v18 = vld [vmem:[#allocation12 + $0xa0] sm:$0xff]   ;;  %v4502_v25 = vld [vmem:[#allocation12 + $0xa8] sm:$0xff]   ;;  %s3764_s4 = sshll.u32 %s6211_s24, 4  ;;  %p4763_p13 = pnand %p4762_p2, %p6214_p0 }
 0x260   : > { %3905 = vmatpush3.bf16.msra.mxu1 %v4486_v8  ;;  %3842 = vmatprep.subr.bf16.mxu0 %v4487_v9  ;;  %v4503_v34 = vld [vmem:[#allocation12 + $0x70] sm:$0xff]   ;;  %v4507_v27 = vld [vmem:[#allocation12 + $0x78] sm:$0xff]   ;;  %v1456_v36 = vld [vmem:[#allocation2 + $0x18] sm:$0x80]  ;;  %s3743_s9 = sshll.u32 %s6212_s6, 5 }
 0x261   : > { %3906 = vmatprep.subr.bf16.mxu1 %v4488_v10  ;;  %v4504_v22 = vld [vmem:[#allocation12 + $0xf0] sm:$0xff]   ;;  %v4508_v28 = vld [vmem:[#allocation12 + $0xf8] sm:$0xff]   ;;  %v1473_v49 = vshrl.u32 %v1456_v36, 16  ;;  %v1328_v42 = vld [vmem:[#allocation2 + $0x10] sm:$0x1]  ;;  %s3386_s23 = sadd.s32 %s3764_s4, %s3743_s9  ;;  %p4764_p1 = pneg %p4763_p13 }
 0x262   : > { %v4505_v23 = vld [vmem:[#allocation12 + $0x30] sm:$0xff]   ;;  %v4509_v29 = vld [vmem:[#allocation12 + $0x38] sm:$0xff]   ;;  %v1352_v52 = vshll.u32 %v1328_v42, 16  ;;  %v4511_v56 = vld [vmem:[#allocation12 + $0x140] sm:$0xff]   ;;  %s3744_s7 = sshll.u32 %s3386_s23, 6 }
 0x263   : > { %3843 = vmatpush3.bf16.msra.mxu0 %v4489_v11  ;;  %v4506_v24 = vld [vmem:[#allocation12 + $0xb0] sm:$0xff]   ;;  %v4510_v33 = vld [vmem:[#allocation12 + $0xb8] sm:$0xff]   ;;  %v1475_v45 = vrot.slane %v1473_v49, 7  ;;  %v4512_v57 = vld [vmem:[#allocation12 + $0x1c0] sm:$0xff]   ;;  %s6014_s0 = scalar_lea.hbm %s6213_s27, %s3744_s7 }
 0x264   : > { %3907 = vmatpush3.bf16.msra.mxu1 %v4490_v12  ;;  %3844 = vmatprep.subr.bf16.mxu0 %v4491_v14  ;;  %v1311_v35 = vld [vmem:[#allocation2 + $0x8] sm:$0xff]  ;;  %v5616_v43 = vld [vmem:[#allocation2 + $0x20] sm:$0xff]  ;;  %v1354_v60 = vrot.slane %v1352_v52, 1  ;;  %v4513_v61 = vld [vmem:[#allocation12 + $0x100] sm:$0xff]  }
 0x265   : > { %3908 = vmatprep.subr.bf16.mxu1 %v4492_v26  ;;  %2681 = vmatprep.mubr.bf16.mxu0 %v1311_v35  ;;  %v1477_v37 = vshrl.u32 %v5616_v43, 16  ;;  %v1480_v46 = vshll.u32 %v5616_v43, 16  ;;  %v1183_v51 = vld [vmem:[#allocation2] sm:$0x80]  ;;  %v1204_v39 = vshrl.u32 %v1311_v35, 16  ;;  %v1207_v41 = vshll.u32 %v1311_v35, 16 }
 0x266   : > { %v1200_v40 = vshrl.u32 %v1183_v51, 16  ;;  %v4514_v7 = vld [vmem:[#allocation12 + $0x180] sm:$0xff]   ;;  %v5622_v1 = vld [vmem:[#allocation2 + $0x38] sm:$0xff]  ;;  %v1330_v3 = vld [vmem:[#allocation2 + $0x28] sm:$0x1] }
 0x267   : > { %3845 = vmatpush3.bf16.msra.mxu0 %v4493_v13  ;;  %v1479_v47 = vrot.slane %v1477_v37, 7  ;;  %v1206_v48 = vrot.slane %v1204_v39, 7  ;;  %v1349_v55 = vrot.slane %v1207_v41, 1  ;;  %v1458_v32 = vld [vmem:[#allocation2 + $0x30] sm:$0x80]  ;;  %v1361_v17 = vrot.slane %v1480_v46, 1 }
 0x268   : > { %3909 = vmatpush3.bf16.msra.mxu1 %v4494_v15  ;;  %3846 = vmatprep.subr.bf16.mxu0 %v4495_v19  ;;  %v1202_v53 = vrot.slane %v1200_v40, 7  ;;  %v1485_v44 = vshrl.u32 %v1458_v32, 16  ;;  %v1489_v50 = vshrl.u32 %v5622_v1, 16  ;;  %v1492_v54 = vshll.u32 %v5622_v1, 16  ;;  %v1185_v4 = vld [vmem:[#allocation2 + $0x18] sm:$0x80] }
 0x269   : > { %3910 = vmatprep.subr.bf16.mxu1 %v4496_v30  ;;  %v1482_v58 = vor.u32 %v1480_v46, %v1479_v47  ;;  %v1209_v59 = vor.u32 %v1207_v41, %v1206_v48  ;;  %v1350_v62 = vor.u32 %v1349_v55, %v1204_v39  ;;  %v4515_v6 = vld [vmem:[#allocation12 + $0x148] sm:$0xff]   ;;  %v1212_v2 = vshrl.u32 %v1185_v4, 16  ;;  %v5632_v19 = vld [vmem:[#allocation2 + $0x50] sm:$0xff]  ;;  %v4520_v35 = vld [vmem:[#allocation12 + $0x1d0] sm:$0xff]  }
 0x26a   : > { %v4516_v5 = vld [vmem:[#allocation12 + $0x1c8] sm:$0xff]   ;;  %v1487_v8 = vrot.slane %v1485_v44, 7  ;;  %v1491_v9 = vrot.slane %v1489_v50, 7  ;;  %v5628_v10 = vor.u32 %v1477_v37, %v1361_v17  ;;  %v1364_v11 = vshll.u32 %v1330_v3, 16  ;;  %v4521_v51 = vld [vmem:[#allocation12 + $0x110] sm:$0xff]   ;;  %v4526_v44 = vld [vmem:[#allocation12 + $0x198] sm:$0xff]  }
 0x26b   : > { %3847 = vmatpush3.bf16.msra.mxu0 %v4497_v16  ;;  %v1483_v63 = vsel %vm1137_vm4, %v1475_v45, %v1482_v58  ;;  %v1210_v0 = vsel %vm1137_vm4, %v1202_v53, %v1209_v59  ;;  %v1355_v38 = vsel %vm1343_vm6, %v1350_v62, %v1354_v60  ;;  %v4517_v12 = vld [vmem:[#allocation12 + $0x108] sm:$0xff]   ;;  %v1214_v14 = vrot.slane %v1212_v2, 7  ;;  %v1460_v16 = vld [vmem:[#allocation2 + $0x48] sm:$0x80]  ;;  %v4522_v39 = vld [vmem:[#allocation12 + $0x190] sm:$0xff]  }
 0x26c   : > { %3911 = vmatpush3.bf16.msra.mxu1 %v4498_v18  ;;  %3848 = vmatprep.subr.bf16.mxu0 %v4499_v20  ;;  %v4518_v26 = vld [vmem:[#allocation12 + $0x188] sm:$0xff]   ;;  %v5630_v13 = vor.u32 %v1492_v54, %v1491_v9  ;;  %v1366_v15 = vrot.slane %v1364_v11, 1  ;;  %v1462_v42 = vld [vmem:[#allocation2 + $0x60] sm:$0x80]  ;;  %v5650_v45 = vld [vmem:[#allocation2 + $0x68] sm:$0xff] }
 0x26d   : > { %3912 = vmatprep.subr.bf16.mxu1 %v4500_v31  ;;  %2778 = vmatprep.mubr.bf16.mxu1 %v1483_v63  ;;  %v1222_v30 = vsel %vm1137_vm4, %v1214_v14, %v1482_v58  ;;  %v1497_v31 = vshrl.u32 %v1460_v16, 16  ;;  %v1189_v47 = vld [vmem:[#allocation2 + $0x48] sm:$0x80]  ;;  %v1509_v52 = vshrl.u32 %v1462_v42, 16  ;;  %v1513_v53 = vshrl.u32 %v5650_v45, 16  ;;  %v4529_v16 = vld [vmem:[#allocation12 + $0x120] sm:$0xff]  }
 0x26e   : > { %v1495_v18 = vsel %vm1137_vm4, %v1487_v8, %v5630_v13  ;;  %v1367_v20 = vsel %vm1343_vm6, %v5628_v10, %v1366_v15  ;;  %v1516_v55 = vshll.u32 %v5650_v45, 16  ;;  %v4523_v60 = vld [vmem:[#allocation12 + $0x158] sm:$0xff]   ;;  %v4527_v8 = vld [vmem:[#allocation12 + $0x160] sm:$0xff]  }
 0x26f   : > { %3849 = vmatpush3.bf16.msra.mxu0 %v4501_v21  ;;  %v1501_v21 = vshrl.u32 %v5632_v19, 16  ;;  %v1515_v62 = vrot.slane %v1513_v53, 7  ;;  %v4524_v63 = vld [vmem:[#allocation12 + $0x1d8] sm:$0xff]   ;;  %v1336_v11 = vld [vmem:[#allocation2 + $0x70] sm:$0x1] }
 0x270   : > { %3913 = vmatpush3.bf16.msra.mxu1 %v4502_v25  ;;  %3850 = vmatprep.subr.bf16.mxu0 %v4503_v34  ;;  %v1187_v25 = vld [vmem:[#allocation2 + $0x30] sm:$0x80]  ;;  %v1332_v34 = vld [vmem:[#allocation2 + $0x40] sm:$0x1] }
 0x271   : > { %3914 = vmatprep.subr.bf16.mxu1 %v4504_v22  ;;  %v1504_v22 = vshll.u32 %v5632_v19, 16  ;;  %v5657_v32 = vor.u32 %v1516_v55, %v1515_v62 }
 0x273   : > { %3851 = vmatpush3.bf16.msra.mxu0 %v4505_v23  ;;  %v1224_v23 = vshrl.u32 %v1187_v25, 16  ;;  %v1385_v48 = vrot.slane %v1504_v22, 1 }
 0x274   : > { %3915 = vmatpush3.bf16.msra.mxu1 %v4506_v24  ;;  %3852 = vmatprep.subr.bf16.mxu0 %v4507_v27  ;;  %v1373_v24 = vrot.slane %v1492_v54, 1  ;;  %v1376_v27 = vshll.u32 %v1332_v34, 16  ;;  %v5661_v54 = vld [vmem:[#allocation2 + $0x80] sm:$0xff]  ;;  %v5675_v34 = vld [vmem:[#allocation2 + $0x98] sm:$0xff] }
 0x275   : > { %3916 = vmatprep.subr.bf16.mxu1 %v4508_v28  ;;  %v1499_v28 = vrot.slane %v1497_v31, 7  ;;  %v1226_v36 = vrot.slane %v1224_v23, 7  ;;  %v5659_v17 = vor.u32 %v1501_v21, %v1385_v48  ;;  %v1525_v2 = vshrl.u32 %v5661_v54, 16  ;;  %v4530_v31 = vld [vmem:[#allocation12 + $0x1a0] sm:$0xff]  }
 0x276   : > { %v5644_v37 = vor.u32 %v1489_v50, %v1373_v24  ;;  %v1378_v46 = vrot.slane %v1376_v27, 1  ;;  %v1464_v50 = vld [vmem:[#allocation2 + $0x78] sm:$0x80]  ;;  %v1528_v3 = vshll.u32 %v5661_v54, 16  ;;  %v1537_v27 = vshrl.u32 %v5675_v34, 16 }
 0x277   : > { %3853 = vmatpush3.bf16.msra.mxu0 %v4509_v29  ;;  %v1503_v29 = vrot.slane %v1501_v21, 7  ;;  %v1234_v41 = vsel %vm1137_vm4, %v1226_v36, %v5630_v13  ;;  %v1527_v15 = vrot.slane %v1525_v2, 7  ;;  %v1540_v36 = vshll.u32 %v5675_v34, 16 }
 0x278   : > { %3917 = vmatpush3.bf16.msra.mxu1 %v4510_v33  ;;  %3966 = vmatprep.subr.bf16.mxu0 %v4511_v56  ;;  %v4519_v33 = vld [vmem:[#allocation12 + $0x150] sm:$0xff]   ;;  %v1236_v56 = vshrl.u32 %v1189_v47, 16  ;;  %v1379_v58 = vsel %vm1343_vm6, %v5644_v37, %v1378_v46 }
 0x279   : > { %4030 = vmatprep.subr.bf16.mxu1 %v4512_v57  ;;  %v5642_v49 = vor.u32 %v1504_v22, %v1503_v29  ;;  %v1334_v57 = vld [vmem:[#allocation2 + $0x58] sm:$0x1]  ;;  %v5673_v21 = vor.u32 %v1528_v3, %v1527_v15  ;;  %v1466_v22 = vld [vmem:[#allocation2 + $0x90] sm:$0x80]  ;;  %v1338_v29 = vld [vmem:[#allocation2 + $0x88] sm:$0x1] }
 0x27a   : > { %2682 = vmatmul.mubr.bf16.vlgmr.msra.gmra.mrb[16].mxu0 %v1210_v0  ;;  %v1388_v59 = vshll.u32 %v1334_v57, 16  ;;  %v1238_v0 = vrot.slane %v1236_v56, 7  ;;  %v1533_v24 = vshrl.u32 %v1466_v22, 16  ;;  %v1412_v42 = vshll.u32 %v1338_v29, 16  ;;  %v4534_v56 = vld [vmem:[#allocation12 + $0x1a8] sm:$0xff]   ;;  %v4541_v29 = vld [vmem:[#allocation12 + $0x138] sm:$0xff]  }
 0x27b   : > { %2779 = vmatmul.mubr.bf16.vlgmr.msra.gmra.mrb[4].mxu1 %v1355_v38  ;;  %3967 = vmatpush3.bf16.msra.mxu0 %v4513_v61  ;;  %v1507_v40 = vsel %vm1137_vm4, %v1499_v28, %v5642_v49  ;;  %v1511_v61 = vrot.slane %v1509_v52, 7  ;;  %v1193_v28 = vld [vmem:[#allocation2 + $0x78] sm:$0x80] }
 0x27c   : > { %4031 = vmatpush3.bf16.msra.mxu1 %v4514_v7  ;;  %2689 = vmatprep.mubr.bf16.mxu0 %v5616_v43  ;;  %v4525_v7 = vld [vmem:[#allocation12 + $0x118] sm:$0xff]   ;;  %v1390_v38 = vrot.slane %v1388_v59, 1  ;;  %v1246_v14 = vsel %vm1137_vm4, %v1238_v0, %v5642_v49  ;;  %v1260_v46 = vshrl.u32 %v1193_v28, 16  ;;  %v4533_v52 = vld [vmem:[#allocation12 + $0x128] sm:$0xff]   ;;  %v1414_v62 = vrot.slane %v1412_v42, 1 }
 0x27d   : > { %3968 = vmatprep.subr.bf16.mxu0 %v4515_v6  ;;  %4032 = vmatprep.subr.bf16.mxu1 %v4516_v5  ;;  %v1519_v4 = vsel %vm1137_vm4, %v1511_v61, %v5657_v32  ;;  %v1521_v6 = vshrl.u32 %v1464_v50, 16  ;;  %v1191_v5 = vld [vmem:[#allocation2 + $0x60] sm:$0x80]  ;;  %v1468_v59 = vld [vmem:[#allocation2 + $0xa8] sm:$0x80] }
 0x27e   : > { %2786 = vmatprep.mubr.bf16.mxu1 %v1495_v18  ;;  %v1248_v9 = vshrl.u32 %v1191_v5, 16  ;;  %v1391_v18 = vsel %vm1343_vm6, %v5659_v17, %v1390_v38  ;;  %v1195_v61 = vld [vmem:[#allocation2 + $0x90] sm:$0x80]  ;;  %v1197_v28 = vld [vmem:[#allocation2 + $0xa8] sm:$0x80] }
 0x27f   : > { %3969 = vmatpush3.bf16.msra.mxu0 %v4517_v12  ;;  %v4528_v12 = vld [vmem:[#allocation12 + $0x1e0] sm:$0xff]   ;;  %v1272_v38 = vshrl.u32 %v1195_v61, 16  ;;  %v1601_v42 = vld [vmem:[#allocation2 + $0x28] sm:$0x1] }
 0x280   : > { %4033 = vmatpush3.bf16.msra.mxu1 %v4518_v26  ;;  %3970 = vmatprep.subr.bf16.mxu0 %v4519_v33  ;;  %v1523_v26 = vrot.slane %v1521_v6, 7  ;;  %v1250_v25 = vrot.slane %v1248_v9, 7  ;;  %v1340_v6 = vld [vmem:[#allocation2 + $0xa0] sm:$0x1] }
 0x281   : > { %4034 = vmatprep.subr.bf16.mxu1 %v4520_v35 }
 0x282   : > { %2690 = vmatmul.mubr.bf16.gmra.mrb[20].mxu0 %v1222_v30  ;;  %v1397_v30 = vrot.slane %v1516_v55, 1  ;;  %v1531_v23 = vsel %vm1137_vm4, %v1523_v26, %v5673_v21  ;;  %v1258_v47 = vsel %vm1137_vm4, %v1250_v25, %v5657_v32  ;;  %v1409_v55 = vrot.slane %v1528_v3, 1  ;;  %v4536_v3 = vld [vmem:[#allocation12 + $0x1f0] sm:$0xff]  }
 0x283   : > { %2787 = vmatmul.mubr.bf16.gmra.mrb[8].mxu1 %v1367_v20  ;;  %2697 = vmatprep.mubr.bf16.mxu0 %v5622_v1  ;;  %v1400_v20 = vshll.u32 %v1336_v11, 16  ;;  %v1470_v26 = vld [vmem:[#allocation2 + $0xc0] sm:$0x80]  ;;  %v1274_v25 = vrot.slane %v1272_v38, 7  ;;  %v1603_v38 = vld [vmem:[#allocation2 + $0x40] sm:$0x1] }
 0x284   : > { %3971 = vmatpush3.bf16.msra.mxu0 %v4521_v51  ;;  %2794 = vmatprep.mubr.bf16.mxu1 %v1507_v40  ;;  %v5681_v33 = vor.u32 %v1513_v53, %v1397_v30  ;;  %v1535_v51 = vrot.slane %v1533_v24, 7  ;;  %v4531_v40 = vld [vmem:[#allocation12 + $0x168] sm:$0xff]   ;;  %v5701_v50 = vor.u32 %v1525_v2, %v1409_v55  ;;  %v5709_v2 = vld [vmem:[#allocation2 + $0xc8] sm:$0xff]  ;;  %v1421_v30 = vrot.slane %v1540_v36, 1 }
 0x285   : > { %4035 = vmatpush3.bf16.msra.mxu1 %v4522_v39  ;;  %3972 = vmatprep.subr.bf16.mxu0 %v4523_v60  ;;  %v1402_v35 = vrot.slane %v1400_v20, 1  ;;  %v1539_v39 = vrot.slane %v1537_v27, 7  ;;  %v5694_v60 = vld [vmem:[#allocation2 + $0xb0] sm:$0xff]  ;;  %v4539_v20 = vld [vmem:[#allocation12 + $0x178] sm:$0xff]   ;;  %v1564_v22 = vshll.u32 %v5709_v2, 16 }
 0x286   : > { %4036 = vmatprep.subr.bf16.mxu1 %v4524_v63  ;;  %v1545_v63 = vshrl.u32 %v1468_v59, 16  ;;  %v1549_v0 = vshrl.u32 %v5694_v60, 16  ;;  %v1415_v15 = vsel %vm1343_vm6, %v5701_v50, %v1414_v62 }
 0x287   : > { %v5688_v48 = vor.u32 %v1540_v36, %v1539_v39  ;;  %v1403_v53 = vsel %vm1343_vm6, %v5681_v33, %v1402_v35  ;;  %v1342_v36 = vld [vmem:[#allocation2 + $0xb8] sm:$0x1] }
 0x288   : > { %3973 = vmatpush3.bf16.msra.mxu0 %v4525_v7  ;;  %v1552_v7 = vshll.u32 %v5694_v60, 16  ;;  %v1547_v5 = vrot.slane %v1545_v63, 7  ;;  %v1436_v55 = vshll.u32 %v1342_v36, 16  ;;  %v1729_v63 = vld [vmem:[#allocation2 + $0x30] sm:$0x80] }
 0x289   : > { %4037 = vmatpush3.bf16.msra.mxu1 %v4526_v44  ;;  %3974 = vmatprep.subr.bf16.mxu0 %v4527_v8  ;;  %v1543_v57 = vsel %vm1137_vm4, %v1535_v51, %v5688_v48  ;;  %v4535_v44 = vld [vmem:[#allocation12 + $0x170] sm:$0xff]   ;;  %v5722_v51 = vor.u32 %v1537_v27, %v1421_v30  ;;  %v4547_v36 = vld [vmem:[#allocation12 + $0x220] sm:$0xff]  }
 0x28a   : > { %2698 = vmatmul.mubr.bf16.gmra.mrb[24].mxu0 %v1234_v41  ;;  %4038 = vmatprep.subr.bf16.mxu1 %v4528_v12  ;;  %v4532_v41 = vld [vmem:[#allocation12 + $0x1e8] sm:$0xff]   ;;  %v4537_v8 = vld [vmem:[#allocation12 + $0x130] sm:$0xff]   ;;  %v1424_v12 = vshll.u32 %v1340_v6, 16  ;;  %v1438_v61 = vrot.slane %v1436_v55, 1  ;;  %v1746_v6 = vshrl.u32 %v1729_v63, 16 }
 0x28b   : > { %2795 = vmatmul.mubr.bf16.gmra.mrb[12].mxu1 %v1379_v58  ;;  %2705 = vmatprep.mubr.bf16.mxu0 %v5632_v19  ;;  %v1262_v58 = vrot.slane %v1260_v46, 7  ;;  %v4542_v46 = vld [vmem:[#allocation12 + $0x1b8] sm:$0xff]  }
 0x28c   : > { %2802 = vmatprep.mubr.bf16.mxu1 %v1519_v4  ;;  %3975 = vmatpush3.bf16.msra.mxu0 %v4529_v16  ;;  %v1551_v4 = vrot.slane %v1549_v0, 7  ;;  %v1557_v16 = vshrl.u32 %v1470_v26, 16  ;;  %v1426_v35 = vrot.slane %v1424_v12, 1 }
 0x28d   : > { %4039 = vmatpush3.bf16.msra.mxu1 %v4530_v31  ;;  %3976 = vmatprep.subr.bf16.mxu0 %v4531_v40  ;;  %v1270_v11 = vsel %vm1137_vm4, %v1262_v58, %v5673_v21  ;;  %v4543_v40 = vld [vmem:[#allocation12 + $0x200] sm:$0xff]  }
 0x28e   : > { %4040 = vmatprep.subr.bf16.mxu1 %v4532_v41  ;;  %v5705_v9 = vor.u32 %v1552_v7, %v1551_v4  ;;  %v1559_v39 = vrot.slane %v1557_v16, 7  ;;  %v1427_v27 = vsel %vm1343_vm6, %v5722_v51, %v1426_v35  ;;  %v1735_v35 = vld [vmem:[#allocation2 + $0x78] sm:$0x80] }
 0x290   : > { %3977 = vmatpush3.bf16.msra.mxu0 %v4533_v52  ;;  %v1555_v31 = vsel %vm1137_vm4, %v1547_v5, %v5705_v9  ;;  %v1284_v52 = vshrl.u32 %v1197_v28, 16  ;;  %v4546_v28 = vld [vmem:[#allocation12 + $0x218] sm:$0xff]  }
 0x291   : > { %4041 = vmatpush3.bf16.msra.mxu1 %v4534_v56  ;;  %3978 = vmatprep.subr.bf16.mxu0 %v4535_v44  ;;  %v1624_v56 = vshll.u32 %v1601_v42, 16 }
 0x292   : > { %2706 = vmatmul.mubr.bf16.gmra.mrb[28].mxu0 %v1246_v14  ;;  %4042 = vmatprep.subr.bf16.mxu1 %v4536_v3  ;;  %v4538_v14 = vld [vmem:[#allocation12 + $0x1b0] sm:$0xff]   ;;  %v1286_v58 = vrot.slane %v1284_v52, 7  ;;  %v1636_v3 = vshll.u32 %v1603_v38, 16 }
 0x293   : > { %2803 = vmatmul.mubr.bf16.gmra.mrb[16].mxu1 %v1391_v18  ;;  %2713 = vmatprep.mubr.bf16.mxu0 %v5650_v45  ;;  %v1561_v18 = vshrl.u32 %v5709_v2, 16  ;;  %v1626_v62 = vrot.slane %v1624_v56, 1  ;;  %v1611_v52 = vld [vmem:[#allocation2 + $0xa0] sm:$0x1]  ;;  %v4550_v56 = vld [vmem:[#allocation12 + $0x238] sm:$0xff]  }
 0x294   : > { %2810 = vmatprep.mubr.bf16.mxu1 %v1531_v23  ;;  %3979 = vmatpush3.bf16.msra.mxu0 %v4537_v8  ;;  %v4540_v23 = vld [vmem:[#allocation12 + $0x1f8] sm:$0xff]   ;;  %v1638_v5 = vrot.slane %v1636_v3, 1  ;;  %v1684_v55 = vshll.u32 %v1611_v52, 16 }
 0x295   : > { %4043 = vmatpush3.bf16.msra.mxu1 %v4538_v14  ;;  %v1563_v24 = vrot.slane %v1561_v18, 7  ;;  %3980 = vmatprep.subr.bf16.mxu0 %v4539_v20  ;;  %v1627_v4 = vsel %vm1343_vm6, %v5628_v10, %v1626_v62  ;;  %v1731_v8 = vld [vmem:[#allocation2 + $0x48] sm:$0x80]  ;;  %v4544_v10 = vld [vmem:[#allocation12 + $0x208] sm:$0xff]   ;;  %v1733_v20 = vld [vmem:[#allocation2 + $0x60] sm:$0x80] }
 0x296   : > { %4044 = vmatprep.subr.bf16.mxu1 %v4540_v23  ;;  %v1758_v14 = vshrl.u32 %v1731_v8, 16  ;;  %v5786_v8 = vld [vmem:[#allocation2 + $0xe0] sm:$0xff] }
 0x297   : > { %v5726_v41 = vor.u32 %v1564_v22, %v1563_v24 }
 0x298   : > { %3981 = vmatpush3.bf16.msra.mxu0 %v4541_v29  ;;  %v1760_v30 = vrot.slane %v1758_v14, 7 }
 0x299   : > { %4045 = vmatpush3.bf16.msra.mxu1 %v4542_v46  ;;  %4162 = vmatprep.subr.bf16.mxu0 %v4543_v40 }
 0x29a   : > { %2714 = vmatmul.mubr.bf16.gmra.mrb[32].mxu0 %v1258_v47  ;;  %4194 = vmatprep.subr.bf16.mxu1 %v4543_v40  ;;  %v1282_v47 = vsel %vm1137_vm4, %v1274_v25, %v5688_v48  ;;  %v1770_v25 = vshrl.u32 %v1733_v20, 16 }
 0x29b   : > { %2811 = vmatmul.mubr.bf16.gmra.mrb[20].mxu1 %v1403_v53  ;;  %2721 = vmatprep.mubr.bf16.mxu0 %v5661_v54  ;;  %v1433_v53 = vrot.slane %v1552_v7, 1  ;;  %v1294_v7 = vsel %vm1137_vm4, %v1286_v58, %v5705_v9  ;;  %v1686_v58 = vrot.slane %v1684_v55, 1 }
 0x29c   : > { %2818 = vmatprep.mubr.bf16.mxu1 %v1543_v57  ;;  %v1567_v57 = vsel %vm1137_vm4, %v1559_v39, %v5726_v41 }
 0x29d   : > { %v5737_v59 = vor.u32 %v1549_v0, %v1433_v53  ;;  %v1748_v0 = vrot.slane %v1746_v6, 7  ;;  %v1687_v63 = vsel %vm1343_vm6, %v5722_v51, %v1686_v58  ;;  %v1615_v6 = vld [vmem:[#allocation2 + $0xd0] sm:$0x1] }
 0x29f   : > { %v1439_v44 = vsel %vm1343_vm6, %v5737_v59, %v1438_v61  ;;  %v1756_v12 = vsel %vm1137_vm4, %v1748_v0, %v5630_v13  ;;  %v1607_v13 = vld [vmem:[#allocation2 + $0x70] sm:$0x1]  ;;  %v1613_v61 = vld [vmem:[#allocation2 + $0xb8] sm:$0x1] }
 0x2a0   : > { %v1660_v24 = vshll.u32 %v1607_v13, 16  ;;  %v1696_v38 = vshll.u32 %v1613_v61, 16 }
 0x2a2   : > { %2722 = vmatmul.mubr.bf16.gmra.mrb[36].mxu0 %v1270_v11  ;;  %v1605_v11 = vld [vmem:[#allocation2 + $0x58] sm:$0x1] }
 0x2a3   : > { %2819 = vmatmul.mubr.bf16.gmra.mrb[24].mxu1 %v1415_v15  ;;  %2729 = vmatprep.mubr.bf16.mxu0 %v5675_v34  ;;  %v1648_v26 = vshll.u32 %v1605_v11, 16  ;;  %v1639_v15 = vsel %vm1343_vm6, %v5644_v37, %v1638_v5  ;;  %v1966_v37 = vrot.slane %v1564_v22, 1  ;;  %v1772_v22 = vrot.slane %v1770_v25, 7  ;;  %v1873_v11 = vld [vmem:[#allocation2 + $0x38] sm:$0xff] }
 0x2a4   : > { %2826 = vmatprep.mubr.bf16.mxu1 %v1555_v31  ;;  %v4545_v31 = vld [vmem:[#allocation12 + $0x210] sm:$0xff]   ;;  %v1708_v5 = vshll.u32 %v1615_v6, 16  ;;  %v1890_v13 = vshrl.u32 %v1873_v11, 16 }
 0x2a5   : > { %v1650_v16 = vrot.slane %v1648_v26, 1  ;;  %v5760_v29 = vor.u32 %v1966_v37, %v1561_v18  ;;  %v1780_v46 = vsel %vm1137_vm4, %v1772_v22, %v5657_v32  ;;  %v1737_v32 = vld [vmem:[#allocation2 + $0x90] sm:$0x80]  ;;  %v1743_v26 = vld [vmem:[#allocation2 + $0xd8] sm:$0x80] }
 0x2a6   : > { %v1794_v53 = vshrl.u32 %v1737_v32, 16  ;;  %v1710_v14 = vrot.slane %v1708_v5, 1 }
 0x2a7   : > { %v1651_v23 = vsel %vm1343_vm6, %v5659_v17, %v1650_v16  ;;  %v1609_v17 = vld [vmem:[#allocation2 + $0x88] sm:$0x1]  ;;  %v1830_v16 = vshrl.u32 %v1743_v26, 16 }
 0x2a8   : > { %v1672_v39 = vshll.u32 %v1609_v17, 16  ;;  %v1876_v17 = vld [vmem:[#allocation2 + $0x58] sm:$0x1] }
 0x2aa   : > { %2730 = vmatmul.mubr.bf16.gmra.mrb[40].mxu0 %v1282_v47  ;;  %v1674_v47 = vrot.slane %v1672_v39, 1 }
 0x2ab   : > { %2827 = vmatmul.mubr.bf16.gmra.mrb[28].mxu1 %v1427_v27  ;;  %2737 = vmatprep.mubr.bf16.mxu0 %v5694_v60 }
 0x2ac   : > { %2834 = vmatprep.mubr.bf16.mxu1 %v1567_v57  ;;  %v1796_v57 = vrot.slane %v1794_v53, 7 }
 0x2ae   : > { %v1804_v62 = vsel %vm1137_vm4, %v1796_v57, %v5688_v48 }
 0x2b2   : > { %2738 = vmatmul.mubr.bf16.gmra.mrb[44].mxu0 %v1294_v7 }
 0x2b3   : > { %2835 = vmatmul.mubr.bf16.gmra.mrb[32].mxu1 %v1439_v44  ;;  %2875 = vmatprep.mubr.bf16.mxu0 %v1627_v4  ;;  %v1698_v44 = vrot.slane %v1696_v38, 1  ;;  %v1741_v4 = vld [vmem:[#allocation2 + $0xc0] sm:$0x80] }
 0x2b4   : > { %2972 = vmatprep.mubr.bf16.mxu1 %v5622_v1  ;;  %v1818_v3 = vshrl.u32 %v1741_v4, 16 }
 0x2b5   : > { %v1699_v0 = vsel %vm1343_vm6, %v5737_v59, %v1698_v44 }
 0x2ba   : > { %2876 = vmatmul.mubr.bf16.vlgmr.msra.gmra.mrb[48].mxu0 %v5616_v43  ;;  %v1768_v43 = vsel %vm1137_vm4, %v1760_v30, %v5642_v49  ;;  %v1662_v49 = vrot.slane %v1660_v24, 1  ;;  %v1877_v24 = vld [vmem:[#allocation2 + $0x68] sm:$0xff] }
 0x2bb   : > { %2973 = vmatmul.mubr.bf16.vlgmr.msra.gmra.mrb[36].mxu1 %v1756_v12  ;;  %4163 = vmatpush3.bf16.msra.mxu0 %v4543_v40  ;;  %v1834_v12 = vshrl.u32 %v5786_v8, 16 }
 0x2bc   : > { %4202 = vmatpush3.bf16.msra.mxu1 %v4543_v40  ;;  %2883 = vmatprep.mubr.bf16.mxu0 %v1639_v15  ;;  %v1663_v18 = vsel %vm1343_vm6, %v5681_v33, %v1662_v49  ;;  %v4548_v40 = vld [vmem:[#allocation12 + $0x228] sm:$0xff]   ;;  %v4549_v33 = vld [vmem:[#allocation12 + $0x230] sm:$0xff]   ;;  %v1892_v15 = vshll.u32 %v1873_v11, 16 }
 0x2bd   : > { %2980 = vmatprep.mubr.bf16.mxu1 %v5632_v19  ;;  %4164 = vmatprep.subr.bf16.mxu0 %v4544_v10  ;;  %v1836_v20 = vrot.slane %v1834_v12, 7 }
 0x2be   : > { %4195 = vmatprep.subr.bf16.mxu1 %v4544_v10  ;;  %v1894_v25 = vrot.slane %v1892_v15, 1 }
 0x2bf   : > { %4165 = vmatpush3.bf16.msra.mxu0 %v4544_v10 }
 0x2c0   : > { %4203 = vmatpush3.bf16.msra.mxu1 %v4544_v10  ;;  %4166 = vmatprep.subr.bf16.mxu0 %v4545_v31  ;;  %v1882_v10 = vld [vmem:[#allocation2 + $0xa0] sm:$0x1]  ;;  %v1895_v49 = vor.u32 %v1894_v25, %v1890_v13 }
 0x2c1   : > { %4196 = vmatprep.subr.bf16.mxu1 %v4545_v31 }
 0x2c2   : > { %2884 = vmatmul.mubr.bf16.gmra.mrb[52].mxu0 %v5622_v1  ;;  %v1782_v1 = vshrl.u32 %v1735_v35, 16 }
 0x2c3   : > { %2981 = vmatmul.mubr.bf16.gmra.mrb[40].mxu1 %v1768_v43  ;;  %2891 = vmatprep.mubr.bf16.mxu0 %v1651_v23  ;;  %v1875_v43 = vld [vmem:[#allocation2 + $0x50] sm:$0xff]  ;;  %v1945_v23 = vshll.u32 %v1882_v10, 16 }
 0x2c4   : > { %2988 = vmatprep.mubr.bf16.mxu1 %v5650_v45  ;;  %4167 = vmatpush3.bf16.msra.mxu0 %v4545_v31  ;;  %v1784_v42 = vrot.slane %v1782_v1, 7  ;;  %v1904_v22 = vshll.u32 %v1875_v43, 16  ;;  %v1878_v1 = vld [vmem:[#allocation2 + $0x70] sm:$0x1]  ;;  %v1902_v39 = vshrl.u32 %v1875_v43, 16 }
 0x2c5   : > { %4204 = vmatpush3.bf16.msra.mxu1 %v4545_v31  ;;  %4168 = vmatprep.subr.bf16.mxu0 %v4546_v28  ;;  %v1711_v31 = vsel %vm1343_vm6, %v5760_v29, %v1710_v14 }
 0x2c6   : > { %4197 = vmatprep.subr.bf16.mxu1 %v4546_v28  ;;  %v1792_v27 = vsel %vm1137_vm4, %v1784_v42, %v5673_v21  ;;  %v1739_v21 = vld [vmem:[#allocation2 + $0xa8] sm:$0x80] }
 0x2c8   : > { %4169 = vmatpush3.bf16.msra.mxu0 %v4546_v28 }
 0x2c9   : > { %4205 = vmatpush3.bf16.msra.mxu1 %v4546_v28  ;;  %4170 = vmatprep.subr.bf16.mxu0 %v4547_v36 }
 0x2ca   : > { %2892 = vmatmul.mubr.bf16.gmra.mrb[56].mxu0 %v5632_v19  ;;  %4198 = vmatprep.subr.bf16.mxu1 %v4547_v36  ;;  %v1675_v19 = vsel %vm1343_vm6, %v5701_v50, %v1674_v47  ;;  %v1906_v47 = vrot.slane %v1904_v22, 1 }
 0x2cb   : > { %2989 = vmatmul.mubr.bf16.gmra.mrb[44].mxu1 %v1780_v46  ;;  %2899 = vmatprep.mubr.bf16.mxu0 %v1663_v18  ;;  %v1916_v46 = vshll.u32 %v1877_v24, 16  ;;  %v1947_v18 = vrot.slane %v1945_v23, 1 }
 0x2cc   : > { %2996 = vmatprep.mubr.bf16.mxu1 %v5661_v54  ;;  %4171 = vmatpush3.bf16.msra.mxu0 %v4547_v36 }
 0x2cd   : > { %4206 = vmatpush3.bf16.msra.mxu1 %v4547_v36  ;;  %4172 = vmatprep.subr.bf16.mxu0 %v4548_v40  ;;  %v1884_v36 = vld [vmem:[#allocation2 + $0xb8] sm:$0x1]  ;;  %v1948_v53 = vsel %vm1343_vm6, %v5722_v51, %v1947_v18 }
 0x2ce   : > { %4199 = vmatprep.subr.bf16.mxu1 %v4548_v40  ;;  %v1957_v32 = vshll.u32 %v1884_v36, 16 }
 0x2d0   : > { %4173 = vmatpush3.bf16.msra.mxu0 %v4548_v40  ;;  %v1959_v58 = vrot.slane %v1957_v32, 1 }
 0x2d1   : > { %4207 = vmatpush3.bf16.msra.mxu1 %v4548_v40  ;;  %4174 = vmatprep.subr.bf16.mxu0 %v4549_v33  ;;  %v1886_v40 = vld [vmem:[#allocation2 + $0xd0] sm:$0x1] }
 0x2d2   : > { %2900 = vmatmul.mubr.bf16.gmra.mrb[60].mxu0 %v5650_v45  ;;  %4200 = vmatprep.subr.bf16.mxu1 %v4549_v33  ;;  %v1806_v45 = vshrl.u32 %v1739_v21, 16  ;;  %v1969_v55 = vshll.u32 %v1886_v40, 16  ;;  %v1960_v51 = vsel %vm1343_vm6, %v5737_v59, %v1959_v58 }
 0x2d3   : > { %2997 = vmatmul.mubr.bf16.gmra.mrb[48].mxu1 %v1792_v27  ;;  %2907 = vmatprep.mubr.bf16.mxu0 %v1675_v19  ;;  %v1918_v27 = vrot.slane %v1916_v46, 1  ;;  %v1921_v19 = vshll.u32 %v1878_v1, 16 }
 0x2d4   : > { %3004 = vmatprep.mubr.bf16.mxu1 %v5675_v34  ;;  %4175 = vmatpush3.bf16.msra.mxu0 %v4549_v33  ;;  %v1808_v7 = vrot.slane %v1806_v45, 7  ;;  %v1888_v45 = vld [vmem:[#allocation2 + $0xe8] sm:$0x1] }
 0x2d5   : > { %4208 = vmatpush3.bf16.msra.mxu1 %v4549_v33  ;;  %4176 = vmatprep.subr.bf16.mxu0 %v4550_v56  ;;  %v1914_v33 = vshrl.u32 %v1877_v24, 16  ;;  %v1923_v61 = vrot.slane %v1921_v19, 1  ;;  %v1981_v4 = vshll.u32 %v1888_v45, 16 }
 0x2d6   : > { %4201 = vmatprep.subr.bf16.mxu1 %v4550_v56  ;;  %v1816_v48 = vsel %vm1137_vm4, %v1808_v7, %v5705_v9  ;;  %v1874_v9 = vld [vmem:[#allocation2 + $0x40] sm:$0x1] }
 0x2d7   : > { %v1897_v37 = vshll.u32 %v1874_v9, 16  ;;  %v1919_v21 = vor.u32 %v1918_v27, %v1914_v33 }
 0x2d8   : > { %4177 = vmatpush3.bf16.msra.mxu0 %v4550_v56 }
 0x2d9   : > { %4209 = vmatpush3.bf16.msra.mxu1 %v4550_v56  ;;  %v1899_v35 = vrot.slane %v1897_v37, 1  ;;  %v1907_v56 = vor.u32 %v1906_v47, %v1902_v39  ;;  %v1924_v44 = vsel %vm1343_vm6, %v1919_v21, %v1923_v61 }
 0x2da   : > { %2908 = vmatmul.mubr.bf16.gmra.mrb[64].mxu0 %v5661_v54  ;;  %v1820_v54 = vrot.slane %v1818_v3, 7 }
 0x2db   : > { %3005 = vmatmul.mubr.bf16.gmra.mrb[52].mxu1 %v1804_v62  ;;  %2915 = vmatprep.mubr.bf16.mxu0 %v1687_v63  ;;  %v1900_v52 = vsel %vm1343_vm6, %v1895_v49, %v1899_v35  ;;  %v1880_v62 = vld [vmem:[#allocation2 + $0x88] sm:$0x1]  ;;  %v1971_v63 = vrot.slane %v1969_v55, 1 }
 0x2dc   : > { %3012 = vmatprep.mubr.bf16.mxu1 %v5694_v60  ;;  %v1828_v30 = vsel %vm1137_vm4, %v1820_v54, %v5726_v41  ;;  %v1832_v41 = vrot.slane %v1830_v16, 7  ;;  %v1933_v7 = vshll.u32 %v1880_v62, 16 }
 0x2dd   : > { %v1972_v6 = vsel %vm1343_vm6, %v5760_v29, %v1971_v63 }
 0x2de   : > { %v1935_v3 = vrot.slane %v1933_v7, 1 }
 0x2e0   : > { %v1936_v5 = vsel %vm1343_vm6, %v5701_v50, %v1935_v3 }
 0x2e2   : > { %2916 = vmatmul.mubr.bf16.gmra.mrb[68].mxu0 %v5675_v34  ;;  %v1837_v34 = vshll.u32 %v5786_v8, 16 }
 0x2e3   : > { %3013 = vmatmul.mubr.bf16.gmra.mrb[56].mxu1 %v1816_v48  ;;  %2923 = vmatprep.mubr.bf16.mxu0 %v1699_v0  ;;  %v1983_v0 = vrot.slane %v1981_v4, 1 }
 0x2e4   : > { %3020 = vmatprep.mubr.bf16.mxu1 %v5709_v2  ;;  %v1839_v28 = vor.u32 %v1837_v34, %v1836_v20 }
 0x2e6   : > { %v1840_v42 = vsel %vm1137_vm4, %v1832_v41, %v1839_v28 }
 0x2ea   : > { %2924 = vmatmul.mubr.bf16.gmra.mrb[72].mxu0 %v5694_v60  ;;  %v1909_v60 = vshll.u32 %v1876_v17, 16 }
 0x2eb   : > { %3021 = vmatmul.mubr.bf16.gmra.mrb[60].mxu1 %v1828_v30  ;;  %2931 = vmatprep.mubr.bf16.mxu0 %v1711_v31 }
 0x2ec   : > { %3028 = vmatprep.mubr.bf16.mxu1 %v5786_v8  ;;  %v1911_v57 = vrot.slane %v1909_v60, 1 }
 0x2ee   : > { %v1912_v38 = vsel %vm1343_vm6, %v1907_v56, %v1911_v57 }
 0x2f2   : > { %2932 = vmatmul.mubr.bf16.gmra.mrb[76].mxu0 %v5709_v2  ;;  %v1978_v2 = vrot.slane %v1837_v34, 1 }
 0x2f3   : > { %3029 = vmatmul.mubr.bf16.gmra.mrb[64].mxu1 %v1840_v42  ;;  %4178 = vmatprep.mubr.bf16.mxu0 %v1900_v52 }
 0x2f4   : > { %4186 = vmatprep.mubr.bf16.mxu1 %v1948_v53  ;;  %v1979_v48 = vor.u32 %v1978_v2, %v1834_v12 }
 0x2f6   : > { %v1984_v59 = vsel %vm1343_vm6, %v1979_v48, %v1983_v0 }
 0x2fa   : > { %4179 = vmatmul.mubr.bf16.vlgmr.msra.gmra.mrb[80].mxu0 %v1912_v38 }
 0x2fb   : > { %4187 = vmatmul.mubr.bf16.vlgmr.msra.gmra.mrb[68].mxu1 %v1960_v51  ;;  %4182 = vmatprep.mubr.bf16.mxu0 %v1924_v44 }
 0x2fc   : > { %4190 = vmatprep.mubr.bf16.mxu1 %v1972_v6 }
 0x302   : > { %4183 = vmatmul.mubr.bf16.gmra.mrb[84].mxu0 %v1936_v5 }
 0x303   : > { %4191 = vmatmul.mubr.bf16.gmra.mrb[72].mxu1 %v1984_v59 }
 0x34d   : > { %v3854_v11 = vpop.f32.mrb[16].mxu0 }
 0x34e   : > { %v3918_v54 = vpop.f32.mrb[4].mxu1  ;;  %v3855_v14 = vpop.f32.mrb[17].mxu0 }
 0x34f   : > { %v3856_v29 = vadd.f32 %v3855_v14, %v3854_v11  ;;  %v3919_v26 = vpop.f32.mrb[5].mxu1  ;;  %v3857_v15 = vpop.f32.mrb[18].mxu0 }
 0x350   : > { %v3920_v9 = vadd.f32 %v3919_v26, %v3918_v54  ;;  %v3921_v10 = vpop.f32.mrb[6].mxu1  ;;  %v3858_v30 = vpop.f32.mrb[19].mxu0 }
 0x351   : > { %v3859_v16 = vadd.f32 %v3858_v30, %v3857_v15  ;;  %v3922_v8 = vpop.f32.mrb[7].mxu1 }
 0x352   : > { %v5816_v12 = vadd.f32 %v3920_v9, %v3856_v29  ;;  %v3923_v20 = vadd.f32 %v3922_v8, %v3921_v10 }
 0x354   : > { %v5818_v34 = vadd.f32 %v3923_v20, %v3859_v16 }
 0x355   : > { %v3860_v50 = vpop.f32.mrb[20].mxu0 }
 0x356   : > { %v3924_v31 = vpop.f32.mrb[8].mxu1  ;;  %v3861_v13 = vpop.f32.mrb[21].mxu0 }
 0x357   : > { %v3862_v25 = vadd.f32 %v3861_v13, %v3860_v50  ;;  %v3925_v37 = vpop.f32.mrb[9].mxu1  ;;  %v3863_v43 = vpop.f32.mrb[22].mxu0 }
 0x358   : > { %v3926_v23 = vadd.f32 %v3925_v37, %v3924_v31  ;;  %v3927_v24 = vpop.f32.mrb[10].mxu1  ;;  %v3864_v41 = vpop.f32.mrb[23].mxu0 }
 0x359   : > { %v3865_v28 = vadd.f32 %v3864_v41, %v3863_v43  ;;  %v3928_v22 = vpop.f32.mrb[11].mxu1 }
 0x35a   : > { %v5820_v49 = vadd.f32 %v3926_v23, %v3862_v25  ;;  %v3929_v35 = vadd.f32 %v3928_v22, %v3927_v24 }
 0x35c   : > { %v5822_v17 = vadd.f32 %v3929_v35, %v3865_v28 }
 0x35d   : > { %v3866_v36 = vpop.f32.mrb[24].mxu0 }
 0x35e   : > { %v3930_v46 = vpop.f32.mrb[12].mxu1  ;;  %v3867_v18 = vpop.f32.mrb[25].mxu0 }
 0x35f   : > { %v3868_v1 = vadd.f32 %v3867_v18, %v3866_v36  ;;  %v3931_v39 = vpop.f32.mrb[13].mxu1  ;;  %v3869_v40 = vpop.f32.mrb[26].mxu0 }
 0x360   : > { %v3932_v42 = vadd.f32 %v3931_v39, %v3930_v46  ;;  %v3933_v47 = vpop.f32.mrb[14].mxu1  ;;  %v3870_v60 = vpop.f32.mrb[27].mxu0 }
 0x361   : > { %v3871_v32 = vadd.f32 %v3870_v60, %v3869_v40  ;;  %v3934_v52 = vpop.f32.mrb[15].mxu1 }
 0x362   : > { %v5824_v33 = vadd.f32 %v3932_v42, %v3868_v1  ;;  %v3935_v27 = vadd.f32 %v3934_v52, %v3933_v47 }
 0x364   : > { %v5826_v19 = vadd.f32 %v3935_v27, %v3871_v32 }
 0x365   : > { %v3872_v53 = vpop.f32.mrb[28].mxu0 }
 0x366   : > { %v3936_v55 = vpop.f32.mrb[16].mxu1  ;;  %v3873_v56 = vpop.f32.mrb[29].mxu0 }
 0x367   : > { %v3874_v57 = vadd.f32 %v3873_v56, %v3872_v53  ;;  %v3937_v58 = vpop.f32.mrb[17].mxu1  ;;  %v3875_v21 = vpop.f32.mrb[30].mxu0 }
 0x368   : > { %v3938_v61 = vadd.f32 %v3937_v58, %v3936_v55  ;;  %v3939_v62 = vpop.f32.mrb[18].mxu1  ;;  %v3876_v63 = vpop.f32.mrb[31].mxu0 }
 0x369   : > { %v3877_v45 = vadd.f32 %v3876_v63, %v3875_v21  ;;  %v3940_v38 = vpop.f32.mrb[19].mxu1 }
 0x36a   : > { %v5828_v7 = vadd.f32 %v3938_v61, %v3874_v57  ;;  %v3941_v51 = vadd.f32 %v3940_v38, %v3939_v62 }
 0x36c   : > { %v5830_v44 = vadd.f32 %v3941_v51, %v3877_v45 }
 0x36d   : > { %v3878_v2 = vpop.f32.mrb[32].mxu0 }
 0x36e   : > { %v3942_v4 = vpop.f32.mrb[20].mxu1  ;;  %v3879_v6 = vpop.f32.mrb[33].mxu0 }
 0x36f   : > { %v3880_v3 = vadd.f32 %v3879_v6, %v3878_v2  ;;  %v3943_v48 = vpop.f32.mrb[21].mxu1  ;;  %v3881_v0 = vpop.f32.mrb[34].mxu0 }
 0x370   : > { %v3944_v5 = vadd.f32 %v3943_v48, %v3942_v4  ;;  %v3945_v59 = vpop.f32.mrb[22].mxu1  ;;  %v3882_v11 = vpop.f32.mrb[35].mxu0 }
 0x371   : > { %v3883_v54 = vadd.f32 %v3882_v11, %v3881_v0  ;;  %v3946_v14 = vpop.f32.mrb[23].mxu1 }
 0x372   : > { %v5832_v29 = vadd.f32 %v3944_v5, %v3880_v3  ;;  %v3947_v26 = vadd.f32 %v3946_v14, %v3945_v59 }
 0x374   : > { %v5834_v15 = vadd.f32 %v3947_v26, %v3883_v54 }
 0x375   : > { %v3884_v9 = vpop.f32.mrb[36].mxu0 }
 0x376   : > { %v3948_v10 = vpop.f32.mrb[24].mxu1  ;;  %v3885_v30 = vpop.f32.mrb[37].mxu0 }
 0x377   : > { %v3886_v16 = vadd.f32 %v3885_v30, %v3884_v9  ;;  %v3949_v8 = vpop.f32.mrb[25].mxu1  ;;  %v3887_v20 = vpop.f32.mrb[38].mxu0 }
 0x378   : > { %v3950_v50 = vadd.f32 %v3949_v8, %v3948_v10  ;;  %v3951_v31 = vpop.f32.mrb[26].mxu1  ;;  %v3888_v13 = vpop.f32.mrb[39].mxu0 }
 0x379   : > { %v3889_v25 = vadd.f32 %v3888_v13, %v3887_v20  ;;  %v3952_v37 = vpop.f32.mrb[27].mxu1 }
 0x37a   : > { %v5836_v43 = vadd.f32 %v3950_v50, %v3886_v16  ;;  %v3953_v23 = vadd.f32 %v3952_v37, %v3951_v31 }
 0x37c   : > { %v5838_v24 = vadd.f32 %v3953_v23, %v3889_v25 }
 0x37d   : > { %v3890_v41 = vpop.f32.mrb[40].mxu0 }
 0x37e   : > { %v3954_v28 = vpop.f32.mrb[28].mxu1  ;;  %v3891_v22 = vpop.f32.mrb[41].mxu0 }
 0x37f   : > { %v3892_v35 = vadd.f32 %v3891_v22, %v3890_v41  ;;  %v3955_v36 = vpop.f32.mrb[29].mxu1  ;;  %v3893_v46 = vpop.f32.mrb[42].mxu0 }
 0x380   : > { %v3956_v18 = vadd.f32 %v3955_v36, %v3954_v28  ;;  %v3957_v1 = vpop.f32.mrb[30].mxu1  ;;  %v3894_v39 = vpop.f32.mrb[43].mxu0 }
 0x381   : > { %v3895_v40 = vadd.f32 %v3894_v39, %v3893_v46  ;;  %v3958_v42 = vpop.f32.mrb[31].mxu1 }
 0x382   : > { %v5840_v47 = vadd.f32 %v3956_v18, %v3892_v35  ;;  %v3959_v60 = vadd.f32 %v3958_v42, %v3957_v1 }
 0x384   : > { %v5842_v32 = vadd.f32 %v3959_v60, %v3895_v40 }
 0x385   : > { %v3896_v52 = vpop.f32.mrb[44].mxu0 }
 0x386   : > { %v3960_v27 = vpop.f32.mrb[32].mxu1  ;;  %v3897_v53 = vpop.f32.mrb[45].mxu0 }
 0x387   : > { %v3898_v55 = vadd.f32 %v3897_v53, %v3896_v52  ;;  %v3961_v56 = vpop.f32.mrb[33].mxu1  ;;  %v3899_v57 = vpop.f32.mrb[46].mxu0 }
 0x388   : > { %v3962_v58 = vadd.f32 %v3961_v56, %v3960_v27  ;;  %v3963_v21 = vpop.f32.mrb[34].mxu1  ;;  %v3900_v61 = vpop.f32.mrb[47].mxu0 }
 0x389   : > { %v3901_v62 = vadd.f32 %v3900_v61, %v3899_v57  ;;  %v3964_v63 = vpop.f32.mrb[35].mxu1 }
 0x38a   : > { %v5844_v45 = vadd.f32 %v3962_v58, %v3898_v55  ;;  %v3965_v38 = vadd.f32 %v3964_v63, %v3963_v21 }
 0x38c   : > { %v5846_v51 = vadd.f32 %v3965_v38, %v3901_v62 }
 0x38d   : > { %v3982_v2 = vpop.f32.mrb[48].mxu0 }
 0x38e   : > { %v4046_v4 = vpop.f32.mrb[36].mxu1  ;;  %v3983_v6 = vpop.f32.mrb[49].mxu0 }
 0x38f   : > { %v3984_v3 = vadd.f32 %v3983_v6, %v3982_v2  ;;  %v4047_v48 = vpop.f32.mrb[37].mxu1  ;;  %v3985_v0 = vpop.f32.mrb[50].mxu0 }
 0x390   : > { %v4048_v5 = vadd.f32 %v4047_v48, %v4046_v4  ;;  %v4049_v59 = vpop.f32.mrb[38].mxu1  ;;  %v3986_v11 = vpop.f32.mrb[51].mxu0 }
 0x391   : > { %v2878_v54 = vadd.f32 %v3984_v3, %v5816_v12  ;;  %v3987_v14 = vadd.f32 %v3986_v11, %v3985_v0  ;;  %v4050_v26 = vpop.f32.mrb[39].mxu1 }
 0x392   : > { %v4051_v9 = vadd.f32 %v4050_v26, %v4049_v59 }
 0x393   : > { %v2881_v10 = vadd.f32 %v3987_v14, %v5818_v34  ;;  %v5850_v30 = vadd.f32 %v4048_v5, %v2878_v54 }
 0x395   : > { %v3988_v16 = vpop.f32.mrb[52].mxu0  ;;  %v5852_v8 = vadd.f32 %v4051_v9, %v2881_v10 }
 0x396   : > { %v4052_v20 = vpop.f32.mrb[40].mxu1  ;;  %v3989_v50 = vpop.f32.mrb[53].mxu0 }
 0x397   : > { %v3990_v31 = vadd.f32 %v3989_v50, %v3988_v16  ;;  %v4053_v13 = vpop.f32.mrb[41].mxu1  ;;  %v3991_v25 = vpop.f32.mrb[54].mxu0 }
 0x398   : > { %v4054_v37 = vadd.f32 %v4053_v13, %v4052_v20  ;;  %v4055_v23 = vpop.f32.mrb[42].mxu1  ;;  %v3992_v41 = vpop.f32.mrb[55].mxu0 }
 0x399   : > { %v2886_v12 = vadd.f32 %v3990_v31, %v5820_v49  ;;  %v3993_v28 = vadd.f32 %v3992_v41, %v3991_v25  ;;  %v4056_v22 = vpop.f32.mrb[43].mxu1 }
 0x39a   : > { %v4057_v35 = vadd.f32 %v4056_v22, %v4055_v23 }
 0x39b   : > { %v2889_v34 = vadd.f32 %v3993_v28, %v5822_v17  ;;  %v5856_v36 = vadd.f32 %v4054_v37, %v2886_v12 }
 0x39d   : > { %v3994_v46 = vpop.f32.mrb[56].mxu0  ;;  %v5858_v18 = vadd.f32 %v4057_v35, %v2889_v34 }
 0x39e   : > { %v4058_v1 = vpop.f32.mrb[44].mxu1  ;;  %v3995_v39 = vpop.f32.mrb[57].mxu0 }
 0x39f   : > { %v3996_v40 = vadd.f32 %v3995_v39, %v3994_v46  ;;  %v4059_v42 = vpop.f32.mrb[45].mxu1  ;;  %v3997_v60 = vpop.f32.mrb[58].mxu0 }
 0x3a0   : > { %v4060_v52 = vadd.f32 %v4059_v42, %v4058_v1  ;;  %v4061_v27 = vpop.f32.mrb[46].mxu1  ;;  %v3998_v53 = vpop.f32.mrb[59].mxu0 }
 0x3a1   : > { %v2894_v49 = vadd.f32 %v3996_v40, %v5824_v33  ;;  %v3999_v55 = vadd.f32 %v3998_v53, %v3997_v60  ;;  %v4062_v56 = vpop.f32.mrb[47].mxu1 }
 0x3a2   : > { %v4063_v57 = vadd.f32 %v4062_v56, %v4061_v27 }
 0x3a3   : > { %v2897_v17 = vadd.f32 %v3999_v55, %v5826_v19  ;;  %v5862_v58 = vadd.f32 %v4060_v52, %v2894_v49 }
 0x3a5   : > { %v4000_v21 = vpop.f32.mrb[60].mxu0  ;;  %v5864_v61 = vadd.f32 %v4063_v57, %v2897_v17 }
 0x3a6   : > { %v4064_v62 = vpop.f32.mrb[48].mxu1  ;;  %v4001_v63 = vpop.f32.mrb[61].mxu0 }
 0x3a7   : > { %v4002_v38 = vadd.f32 %v4001_v63, %v4000_v21  ;;  %v4065_v2 = vpop.f32.mrb[49].mxu1  ;;  %v4003_v4 = vpop.f32.mrb[62].mxu0 }
 0x3a8   : > { %v4066_v6 = vadd.f32 %v4065_v2, %v4064_v62  ;;  %v4067_v3 = vpop.f32.mrb[50].mxu1  ;;  %v4004_v48 = vpop.f32.mrb[63].mxu0 }
 0x3a9   : > { %v2902_v33 = vadd.f32 %v4002_v38, %v5828_v7  ;;  %v4005_v0 = vadd.f32 %v4004_v48, %v4003_v4  ;;  %v4068_v5 = vpop.f32.mrb[51].mxu1 }
 0x3aa   : > { %v4069_v59 = vadd.f32 %v4068_v5, %v4067_v3 }
 0x3ab   : > { %v2905_v19 = vadd.f32 %v4005_v0, %v5830_v44  ;;  %v5868_v11 = vadd.f32 %v4066_v6, %v2902_v33 }
 0x3ad   : > { %v4006_v54 = vpop.f32.mrb[64].mxu0  ;;  %v5870_v14 = vadd.f32 %v4069_v59, %v2905_v19 }
 0x3ae   : > { %v4070_v26 = vpop.f32.mrb[52].mxu1  ;;  %v4007_v9 = vpop.f32.mrb[65].mxu0 }
 0x3af   : > { %v4008_v10 = vadd.f32 %v4007_v9, %v4006_v54  ;;  %v4071_v16 = vpop.f32.mrb[53].mxu1  ;;  %v4009_v20 = vpop.f32.mrb[66].mxu0 }
 0x3b0   : > { %v4072_v50 = vadd.f32 %v4071_v16, %v4070_v26  ;;  %v4073_v31 = vpop.f32.mrb[54].mxu1  ;;  %v4010_v13 = vpop.f32.mrb[67].mxu0 }
 0x3b1   : > { %v2910_v7 = vadd.f32 %v4008_v10, %v5832_v29  ;;  %v4011_v25 = vadd.f32 %v4010_v13, %v4009_v20  ;;  %v4074_v37 = vpop.f32.mrb[55].mxu1 }
 0x3b2   : > { %v4075_v23 = vadd.f32 %v4074_v37, %v4073_v31 }
 0x3b3   : > { %v2913_v44 = vadd.f32 %v4011_v25, %v5834_v15  ;;  %v3007_v41 = vadd.f32 %v4072_v50, %v2910_v7  ;;  %v5889_v25 = vld [vmem:[%s6209_s10] ss:$0 sm:$0xff]  ;;  %s4765_s10 = sshll.u32 %s4930_s30, 4  ;;  %s4766_s10 = int_to_ptr.vmem [resolvable:$false] %s4765_s10 }
 0x3b4   : > { %s4767_s13 = scalar_lea.vmem %s4766_s10, 2048  ;;  %p4768_p8 = scmp.lt.s32.totalorder %s6016_s5, %s4766_s10 }
 0x3b5   : > { %v4012_v12 = vpop.f32.mrb[68].mxu0  ;;  %v5874_v28 = vadd.f32 %v4075_v23, %v2913_v44  ;;  %p4769_p5 = scmp.lt.s32.totalorder %s4767_s13, %s4761_s21 }
 0x3b6   : > { %v4076_v22 = vpop.f32.mrb[56].mxu1  ;;  %v4013_v35 = vpop.f32.mrb[69].mxu0 }
 0x3b7   : > { %v4014_v34 = vadd.f32 %v4013_v35, %v4012_v12  ;;  %v4077_v46 = vpop.f32.mrb[57].mxu1  ;;  %v4015_v1 = vpop.f32.mrb[70].mxu0  ;;  %p4770_p6 = por %p4769_p5, %p4768_p8 }
 0x3b8   : > { %v4078_v39 = vadd.f32 %v4077_v46, %v4076_v22  ;;  %v4079_v40 = vpop.f32.mrb[58].mxu1  ;;  %v4016_v42 = vpop.f32.mrb[71].mxu0 }
 0x3b9   : > { %v2918_v60 = vadd.f32 %v4014_v34, %v5836_v43  ;;  %v4017_v29 = vadd.f32 %v4016_v42, %v4015_v1  ;;  %v4080_v52 = vpop.f32.mrb[59].mxu1  ;;  %p4771_p9 = pnand %p4770_p6, %p4764_p1 }
 0x3ba   : > { %v4081_v27 = vadd.f32 %v4080_v52, %v4079_v40 }
 0x3bb   : > { %v2921_v53 = vadd.f32 %v4017_v29, %v5838_v24  ;;  %v3015_v15 = vadd.f32 %v4078_v39, %v2918_v60 }
 0x3bd   : > { %v4018_v49 = vpop.f32.mrb[72].mxu0  ;;  %v3018_v55 = vadd.f32 %v4081_v27, %v2921_v53 }
 0x3be   : > { %v4082_v56 = vpop.f32.mrb[60].mxu1  ;;  %v4019_v57 = vpop.f32.mrb[73].mxu0 }
 0x3bf   : > { %v4020_v17 = vadd.f32 %v4019_v57, %v4018_v49  ;;  %v4083_v21 = vpop.f32.mrb[61].mxu1  ;;  %v4021_v62 = vpop.f32.mrb[74].mxu0 }
 0x3c0   : > { %v4084_v63 = vadd.f32 %v4083_v21, %v4082_v56  ;;  %v4085_v38 = vpop.f32.mrb[62].mxu1  ;;  %v4022_v2 = vpop.f32.mrb[75].mxu0 }
 0x3c1   : > { %v2926_v4 = vadd.f32 %v4020_v17, %v5840_v47  ;;  %v4023_v6 = vadd.f32 %v4022_v2, %v4021_v62  ;;  %v4086_v43 = vpop.f32.mrb[63].mxu1 }
 0x3c2   : > { %v4087_v3 = vadd.f32 %v4086_v43, %v4085_v38 }
 0x3c3   : > { %v2929_v48 = vadd.f32 %v4023_v6, %v5842_v32  ;;  %v5880_v33 = vadd.f32 %v4084_v63, %v2926_v4 }
 0x3c5   : > { %v4024_v24 = vpop.f32.mrb[76].mxu0  ;;  %v5882_v0 = vadd.f32 %v4087_v3, %v2929_v48 }
 0x3c6   : > { %v4088_v5 = vpop.f32.mrb[64].mxu1  ;;  %v4025_v59 = vpop.f32.mrb[77].mxu0 }
 0x3c7   : > { %v4026_v19 = vadd.f32 %v4025_v59, %v4024_v24  ;;  %v4089_v54 = vpop.f32.mrb[65].mxu1  ;;  %v4027_v26 = vpop.f32.mrb[78].mxu0 }
 0x3c8   : > { %v4090_v9 = vadd.f32 %v4089_v54, %v4088_v5  ;;  %v4091_v10 = vpop.f32.mrb[66].mxu1  ;;  %v4028_v16 = vpop.f32.mrb[79].mxu0 }
 0x3c9   : > { %v2934_v47 = vadd.f32 %v4026_v19, %v5844_v45  ;;  %v4029_v20 = vadd.f32 %v4028_v16, %v4027_v26  ;;  %v4092_v50 = vpop.f32.mrb[67].mxu1  ;;  %v5895_v45 = vld [vmem:[%s6210_s1] ss:$0 sm:$0xff] }
 0x3ca   : > { %v4093_v31 = vadd.f32 %v4092_v50, %v4091_v10 }
 0x3cb   : > { %v2937_v32 = vadd.f32 %v4029_v20, %v5846_v51  ;;  %v3031_v13 = vadd.f32 %v4090_v9, %v2934_v47 }
 0x3cd   : > { %v4180_v7 = vpop.f32.mrb[80].mxu0  ;;  %v3034_v37 = vadd.f32 %v4093_v31, %v2937_v32 }
 0x3ce   : > { %v3080_v23 = vadd.f32 %v4180_v7, %v5856_v36  ;;  %v4188_v44 = vpop.f32.mrb[68].mxu1  ;;  %v3071_v12 = vpop.f32.mrb[81].mxu0 }
 0x3cf   : > { %v3112_v22 = vadd.f32 %v4188_v44, %v3015_v15  ;;  %v3072_v51 = vadd.f32 %v3071_v12, %v5850_v30  ;;  %v3103_v35 = vpop.f32.mrb[69].mxu1  ;;  %v4181_v34 = vpop.f32.mrb[82].mxu0 }
 0x3d0   : > { %v3143_v46 = vmul.f32 %v5889_v25, %v3080_v23  ;;  %v3104_v1 = vadd.f32 %v3103_v35, %v3007_v41  ;;  %v3083_v39 = vadd.f32 %v4181_v34, %v5858_v18  ;;  %v4189_v40 = vpop.f32.mrb[70].mxu1  ;;  %v3074_v42 = vpop.f32.mrb[83].mxu0 }
 0x3d1   : > { %v3151_v36 = vmul.f32 %v5889_v25, %v3112_v22  ;;  %v3141_v60 = vmul.f32 %v5889_v25, %v3072_v51  ;;  %v3115_v29 = vadd.f32 %v4189_v40, %v3018_v55  ;;  %v3075_v52 = vadd.f32 %v3074_v42, %v5852_v8  ;;  %v3106_v27 = vpop.f32.mrb[71].mxu1 }
 0x3d2   : > { %v5904_v53 = vadd.f32 %v5895_v45, %v3143_v46  ;;  %v3149_v30 = vmul.f32 %v5889_v25, %v3104_v1  ;;  %v3144_v15 = vmul.f32 %v5889_v25, %v3083_v39  ;;  %v3107_v41 = vadd.f32 %v3106_v27, %v5874_v28 }
 0x3d3   : > { %v5910_v18 = vadd.f32 %v5895_v45, %v3151_v36  ;;  %v5913_v49 = vadd.f32 %v5895_v45, %v3141_v60  ;;  %v3152_v55 = vmul.f32 %v5889_v25, %v3115_v29  ;;  %v3142_v8 = vmul.f32 %v5889_v25, %v3075_v52 }
 0x3d4   : > { %v3710_v56 = vmul.f32 -1.442695, %v5904_v53  ;;  %v5919_v57 = vadd.f32 %v5895_v45, %v3149_v30  ;;  %v5922_v17 = vadd.f32 %v5895_v45, %v3144_v15  ;;  %v3150_v28 = vmul.f32 %v5889_v25, %v3107_v41 }
 0x3d5   : > { %v3718_v21 = vmul.f32 -1.442695, %v5910_v18  ;;  %v3708_v62 = vmul.f32 -1.442695, %v5913_v49  ;;  %v5928_v63 = vadd.f32 %v5895_v45, %v3152_v55  ;;  %v5931_v38 = vadd.f32 %v5895_v45, %v3142_v8  ;;  %v4184_v2 = vpop.f32.mrb[84].mxu0 }
 0x3d6   : > { %4551 = vpow2.f32 %v3710_v56  ;;  %v3716_v4 = vmul.f32 -1.442695, %v5919_v57  ;;  %v3711_v6 = vmul.f32 -1.442695, %v5922_v17  ;;  %v5936_v43 = vadd.f32 %v5895_v45, %v3150_v28  ;;  %v4192_v3 = vpop.f32.mrb[72].mxu1  ;;  %v3087_v48 = vpop.f32.mrb[85].mxu0 }
 0x3d7   : > { %4553 = vpow2.f32 %v3718_v21  ;;  %v3719_v24 = vmul.f32 -1.442695, %v5928_v63  ;;  %v3709_v5 = vmul.f32 -1.442695, %v5931_v38  ;;  %v3096_v59 = vadd.f32 %v4184_v2, %v5868_v11  ;;  %v3119_v19 = vpop.f32.mrb[73].mxu1  ;;  %v4185_v54 = vpop.f32.mrb[86].mxu0 }
 0x3d8   : > { %4555 = vpow2.f32 %v3708_v62  ;;  %v3717_v26 = vmul.f32 -1.442695, %v5936_v43  ;;  %v3128_v9 = vadd.f32 %v4192_v3, %v3031_v13  ;;  %v3088_v10 = vadd.f32 %v3087_v48, %v5862_v58  ;;  %v4193_v16 = vpop.f32.mrb[74].mxu1  ;;  %v3090_v47 = vpop.f32.mrb[87].mxu0 }
 0x3d9   : > { %4557 = vpow2.f32 %v3716_v4  ;;  %v3147_v20 = vmul.f32 %v5889_v25, %v3096_v59  ;;  %v3120_v50 = vadd.f32 %v3119_v19, %v5880_v33  ;;  %v3099_v31 = vadd.f32 %v4185_v54, %v5870_v14  ;;  %v3122_v32 = vpop.f32.mrb[75].mxu1 }
 0x3da   : > { %4559 = vpow2.f32 %v3711_v6  ;;  %v3155_v11 = vmul.f32 %v5889_v25, %v3128_v9  ;;  %v3145_v7 = vmul.f32 %v5889_v25, %v3088_v10  ;;  %v3131_v23 = vadd.f32 %v4193_v16, %v3034_v37 }
 0x3db   : > { %4561 = vpow2.f32 %v3719_v24  ;;  %v5949_v13 = vadd.f32 %v5895_v45, %v3147_v20  ;;  %v3153_v58 = vmul.f32 %v5889_v25, %v3120_v50  ;;  %v3091_v51 = vadd.f32 %v3090_v47, %v5864_v61 }
 0x3dc   : > { %4563 = vpow2.f32 %v3709_v5  ;;  %v5953_v44 = vadd.f32 %v5895_v45, %v3155_v11  ;;  %v5956_v33 = vadd.f32 %v5895_v45, %v3145_v7  ;;  %v3148_v34 = vmul.f32 %v5889_v25, %v3099_v31 }
 0x3dd   : > { %4565 = vpow2.f32 %v3717_v26  ;;  %v3714_v14 = vmul.f32 -1.442695, %v5949_v13  ;;  %v5960_v12 = vadd.f32 %v5895_v45, %v3153_v58  ;;  %v3123_v46 = vadd.f32 %v3122_v32, %v5882_v0 }
 0x3de   : > { %v3722_v37 = vmul.f32 -1.442695, %v5953_v44  ;;  %v3712_v22 = vmul.f32 -1.442695, %v5956_v33  ;;  %v5969_v61 = vadd.f32 %v5895_v45, %v3148_v34  ;;  %v3156_v30 = vmul.f32 %v5889_v25, %v3131_v23 }
 0x3df   : > { %4567 = vpow2.f32 %v3714_v14  ;;  %v3720_v35 = vmul.f32 -1.442695, %v5960_v12  ;;  %v3146_v41 = vmul.f32 %v5889_v25, %v3091_v51  ;;  %v3154_v56 = vmul.f32 %v5889_v25, %v3123_v46 }
 0x3e0   : > { %v4552_v1 = vpop.eup %4551  ;;  %4569 = vpow2.f32 %v3722_v37  ;;  %v3715_v62 = vmul.f32 -1.442695, %v5969_v61  ;;  %v5976_v4 = vadd.f32 %v5895_v45, %v3156_v30 }
 0x3e1   : > { %v4554_v39 = vpop.eup %4553  ;;  %v3230_v40 = vadd.f32 1.0, %v4552_v1  ;;  %4571 = vpow2.f32 %v3712_v22  ;;  %v5979_v3 = vadd.f32 %v5895_v45, %v3146_v41  ;;  %v5982_v24 = vadd.f32 %v5895_v45, %v3154_v56 }
 0x3e2   : > { %v4556_v42 = vpop.eup %4555  ;;  %v3238_v36 = vadd.f32 1.0, %v4554_v39  ;;  %4573 = vpow2.f32 %v3720_v35  ;;  %v3723_v59 = vmul.f32 -1.442695, %v5976_v4 }
 0x3e3   : > { %v4558_v60 = vpop.eup %4557  ;;  %4575 = vrcp.f32 %v3230_v40  ;;  %v3228_v29 = vadd.f32 1.0, %v4556_v42  ;;  %v3713_v54 = vmul.f32 -1.442695, %v5979_v3  ;;  %v3721_v9 = vmul.f32 -1.442695, %v5982_v24 }
 0x3e4   : > { %v4560_v52 = vpop.eup %4559  ;;  %4577 = vrcp.f32 %v3238_v36  ;;  %v3236_v27 = vadd.f32 1.0, %v4558_v60 }
 0x3e5   : > { %v4562_v0 = vpop.eup %4561  ;;  %4579 = vrcp.f32 %v3228_v29  ;;  %v3231_v15 = vadd.f32 1.0, %v4560_v52 }
 0x3e6   : > { %v4564_v55 = vpop.eup %4563  ;;  %4581 = vrcp.f32 %v3236_v27  ;;  %v3239_v8 = vadd.f32 1.0, %v4562_v0 }
 0x3e7   : > { %v4566_v28 = vpop.eup %4565  ;;  %4583 = vrcp.f32 %v3231_v15  ;;  %v3229_v21 = vadd.f32 1.0, %v4564_v55 }
 0x3e8   : > { %4585 = vrcp.f32 %v3239_v8  ;;  %v3237_v2 = vadd.f32 1.0, %v4566_v28 }
 0x3e9   : > { %v4568_v6 = vpop.eup %4567  ;;  %4587 = vrcp.f32 %v3229_v21 }
 0x3ea   : > { %v4570_v48 = vpop.eup %4569  ;;  %4589 = vrcp.f32 %v3237_v2  ;;  %v3234_v31 = vadd.f32 1.0, %v4568_v6 }
 0x3eb   : > { %v4572_v25 = vpop.eup %4571  ;;  %4591 = vpow2.f32 %v3715_v62 }
 0x3ec   : > { %v4574_v5 = vpop.eup %4573  ;;  %4593 = vpow2.f32 %v3723_v59  ;;  %v3232_v46 = vadd.f32 1.0, %v4572_v25 }
 0x3ed   : > { %v4576_v19 = vpop.eup %4575  ;;  %4595 = vpow2.f32 %v3713_v54 }
 0x3ee   : > { %v4578_v26 = vpop.eup %4577  ;;  %v3278_v45 = vmul.f32 %v4576_v19, %v5904_v53  ;;  %4597 = vpow2.f32 %v3721_v9 }
 0x3ef   : > { %v4580_v10 = vpop.eup %4579  ;;  %v3286_v11 = vmul.f32 %v4578_v26, %v5910_v18  ;;  %4599 = vrcp.f32 %v3234_v31  ;;  %v3242_v18 = vadd.f32 1.0, %v4570_v48 }
 0x3f0   : > { %v4582_v16 = vpop.eup %4581  ;;  %v3276_v58 = vmul.f32 %v4580_v10, %v5913_v49  ;;  %v3240_v49 = vadd.f32 1.0, %v4574_v5 }
 0x3f1   : > { %v4584_v47 = vpop.eup %4583  ;;  %v3284_v53 = vmul.f32 %v4582_v16, %v5919_v57 }
 0x3f2   : > { %v4586_v20 = vpop.eup %4585  ;;  %v3279_v50 = vmul.f32 %v4584_v47, %v5922_v17 }
 0x3f3   : > { %v4588_v32 = vpop.eup %4587  ;;  %v3287_v7 = vmul.f32 %v4586_v20, %v5928_v63 }
 0x3f4   : > { %v4590_v23 = vpop.eup %4589  ;;  %v3773_v14 = vpack.c.bf16 %v3279_v50, %v3278_v45  ;;  %v3277_v37 = vmul.f32 %v4588_v32, %v5931_v38 }
 0x3f5   : > { %v4592_v22 = vpop.eup %4591  ;;  %v3793_v17 = vpack.c.bf16 %v3287_v7, %v3286_v11  ;;  %v3285_v51 = vmul.f32 %v4590_v23, %v5936_v43 }
 0x3f6   : > { %3805 = vst [vmem:[%s5612_s3 + $0x8] sm:$0xff] %v3773_v14   ;;  %v3768_v35 = vpack.c.bf16 %v3277_v37, %v3276_v58  ;;  %v3235_v34 = vadd.f32 1.0, %v4592_v22  ;;  %v4594_v38 = vpop.eup %4593 }
 0x3f7   : > { %3809 = vst [vmem:[%s5612_s3 + $0x28] sm:$0xff] %v3793_v17   ;;  %v3788_v63 = vpack.c.bf16 %v3285_v51, %v3284_v53  ;;  %v4596_v57 = vpop.eup %4595  ;;  %v3243_v1 = vadd.f32 1.0, %v4594_v38 }
 0x3f8   : > { %3769 = vst [vmem:[%s5612_s3] sm:$0xff] %v3768_v35   ;;  %4601 = vrcp.f32 %v3235_v34  ;;  %v4598_v43 = vpop.eup %4597  ;;  %v3233_v39 = vadd.f32 1.0, %v4596_v57 }
 0x3f9   : > { %3808 = vst [vmem:[%s5612_s3 + $0x20] sm:$0xff] %v3788_v63   ;;  %4603 = vrcp.f32 %v3242_v18  ;;  %v3241_v40 = vadd.f32 1.0, %v4598_v43  ;;  %v4600_v42 = vpop.eup %4599 }
 0x3fa   : > { %4605 = vrcp.f32 %v3232_v46  ;;  %v3282_v60 = vmul.f32 %v4600_v42, %v5949_v13 }
 0x3fb   : > { %4607 = vrcp.f32 %v3240_v49 }
 0x3fc   : > { %4609 = vrcp.f32 %v3243_v1 }
 0x3fd   : > { %4611 = vrcp.f32 %v3233_v39 }
 0x3fe   : > { %4613 = vrcp.f32 %v3241_v40 }
 0x402   : > { %v4602_v36 = vpop.eup %4601 }
 0x403   : > { %v3283_v29 = vmul.f32 %v4602_v36, %v5969_v61  ;;  %v4604_v52 = vpop.eup %4603 }
 0x404   : > { %v4606_v27 = vpop.eup %4605  ;;  %v3290_v55 = vmul.f32 %v4604_v52, %v5953_v44 }
 0x405   : > { %v3783_v30 = vpack.c.bf16 %v3283_v29, %v3282_v60  ;;  %v4608_v0 = vpop.eup %4607  ;;  %v3280_v61 = vmul.f32 %v4606_v27, %v5956_v33 }
 0x406   : > { %v4610_v15 = vpop.eup %4609  ;;  %v3288_v28 = vmul.f32 %v4608_v0, %v5960_v12 }
 0x407   : > { %3807 = vst [vmem:[%s5612_s3 + $0x18] sm:$0xff] %v3783_v30   ;;  %v4612_v41 = vpop.eup %4611  ;;  %v3291_v8 = vmul.f32 %v4610_v15, %v5976_v4 }
 0x408   : > { %v4614_v13 = vpop.eup %4613  ;;  %v3281_v56 = vmul.f32 %v4612_v41, %v5979_v3 }
 0x409   : > { %v3803_v21 = vpack.c.bf16 %v3291_v8, %v3290_v55  ;;  %v3289_v62 = vmul.f32 %v4614_v13, %v5982_v24 }
 0x40a   : > { %v3778_v2 = vpack.c.bf16 %v3281_v56, %v3280_v61 }
 0x40b   : > { %3811 = vst [vmem:[%s5612_s3 + $0x38] sm:$0xff] %v3803_v21   ;;  %v3798_v44 = vpack.c.bf16 %v3289_v62, %v3288_v28 }
 0x40c   : > { %3806 = vst [vmem:[%s5612_s3 + $0x10] sm:$0xff] %v3778_v2  }
 0x40d   : > { %3810 = vst [vmem:[%s5612_s3 + $0x30] sm:$0xff] %v3798_v44  }
 0x40e   : > { %4774 = shalt.err (!%p4771_p9)
}
 0x40f   : > { %s4775_s3 = scalar_lea.hbm %s6014_s0, 1024  ;;  %s4779_s24 = scalar_lea.hbm %s6213_s27, 4096 }
 0x410   : > { %p4776_p11 = scmp.ne.s32.totalorder %s6014_s0, %s4775_s3  ;;  %p4780_p4 = scmp.lt.u32.totalorder %s6014_s0, %s6213_s27 }
 0x411   : > { %p4781_p10 = scmp.lt.u32.totalorder %s4779_s24, %s4775_s3  ;;  %p4783_p2 = scmp.lt.u32.totalorder %s4775_s3, %s6014_s0 }
 0x412   : > { %p4777_p3 = pnand %p4776_p11, %p6214_p0 }
 0x413   : > { %p4782_p12 = por %p4781_p10, %p4780_p4 }
 0x414   : > { %p4778_p7 = pneg %p4777_p3 }
 0x415   : > { %p4784_p13 = por %p4783_p2, %p4782_p12 }
 0x417   : > { %p4785_p1 = pnand %p4784_p13, %p4778_p7 }
 0x419   : > { %4788 = shalt.err (!%p4785_p1)
}
 0x41a   : > { %s4931_s9 = smov 64   ;;  %s4932_s23 = smov 4  }
 0x41b   : > { %4224 = dma.vmem_to_hbm [thread:$0]  (%p6214_p0), %s6016_s5, 1024, %s6014_s0, %s3373_s20, %s4931_s9, %s4931_s9, %s4932_s23  }
 0x41c PF: > { %p4252_p8 = scmp.ge.s32.totalorder %s4919_s22, 2  ;;  %s3404_s7 = sand.u32 1, %s4891_s15  }
 0x41d   : > { %p6215_p5 = scmp.ne.s32.totalorder %s6175_s2, 0  ;;  %s3405_s26 = scalar_lea.sflag [#allocation6], %s3404_s7 }
 0x41f   : > { %p4244_p6 = pnand %p4252_p8, %p6215_p5 }
 0x421   : > { %4862 = dma.done.wait (!%p4244_p6), %s3405_s26, 1024  }
 0x422   : > { %4864 = vsyncadd (!%p4244_p6), %s3405_s26, 4294966272  ;;  %s29_s22 = sadd.s32 1, %s4919_s22   ;;  %s6217_s30 = sld [smem:[#allocation20_spill]] }
 0x423   : > { %p6050_p9 = scmp.ge.s32.totalorder %s29_s22, 6   ;;  %s6218_s10 = sld [smem:[#allocation21_spill]] }
 0x424   : > { %s6219_s25 = sld [smem:[#allocation22_spill]]  ;;  %s6220_s28 = smov %s5143_s12 }
 0x425   : > { %s6221_s18 = sld [smem:[#allocation25_spill]]  ;;  %s6222_s2 = sld [smem:[#allocation26_spill]] }
 0x426   : > { %s6223_s20 = sld [smem:[#allocation28_spill]]  ;;  %s6224_s21 = sld [smem:[#allocation29_spill]] }
 0x427   : > { %s6226_s11 = smov %s6249_s19  ;;  %s6228_s13 = smov %s4887_s14 }
 0x428   : > { %s6229_s14 = smov %s6220_s28  ;;  %s6230_s15 = smov %s4895_s16 }
 0x429   : > { %s6231_s16 = smov %s4899_s17  ;;  %s6232_s17 = smov %s5234_s29 }
 0x42a   : > { %s6227_s12 = smov %s6219_s25  ;;  %28 = sbr.rel (!%p6050_p9) target bundleno = 24 (0x18), region = 144 }
 0x42b   : > { %s6233_s19 = smov %s6222_s2 }
 0x431   :  { %3410 = vsyncpa [#allocation5], 1 }
 0x432   :  { %3412 = vsyncpa [#allocation5 + $0x1], 1 }
 0x433   :  { %3413 = vsyncpa [#allocation8], 1 }
 0x434   :  { %3415 = vsyncpa [#allocation8 + $0x1], 1 }
 0x435   :  { %3416 = vsyncpa [#allocation11], 1 }
 0x436   :  { %3417 = vsyncpa [#allocation6], 1 }
 0x437   :  { %3419 = vsyncpa [#allocation6 + $0x1], 1 }

</bundles_post_ra>
